<compile_context>
chip_gen: v6e
topology: v6e:2x2x1
jax: 0.10.0
libtpu: 0.0.40
codegen_flags: <defaults>
</compile_context>

<pallas_src>
import functools
import inspect

import jax
import jax.numpy as jnp
from jax import lax
from jax.experimental import pallas as pl
from jax.experimental.pallas import tpu as pltpu

try:
    _HAS_BUFFERED = (hasattr(pl, "Buffered") and
                     "pipeline_mode" in inspect.signature(pl.BlockSpec).parameters)
except Exception:  # pragma: no cover - feature detection only
    _HAS_BUFFERED = False


def cnn_block_kernel(x_ref, w_ref, b_ref, gamma_ref, beta_ref, gmat_ref, mask_ref,
                     out_ref, xcat_ref, *, KH, KW, Cin_pad, Wp, L, Sv,
                     group_count, eps):
    # x_ref    : (1, Cin_pad, S) bf16   halo-padded flattened sample, S=(H+3)*Wp
    # w_ref    : (KH, Cout_t, KW*Cin_pad) bf16   columns ordered (kw, cin)
    # b/gamma/beta_ref : (Cout_t, 1) f32
    # gmat_ref : (Cout_t, Cout_t) f32   per-tile group membership matrix
    # mask_ref : (1, L) f32             1.0 on valid columns (j < W), else 0.0
    # out_ref  : (1, Cout_t, L) bf16
    # xcat_ref : (KW*Cin_pad, Sv) bf16  persistent kw-shifted activation scratch

    # Build the 3 kw-shifted copies of the sample once per sample: x is revisited
    # across the Cout-tile axis (program_id(1)), which iterates innermost and is
    # marked "arbitrary", so the scratch carry is well defined.
    @pl.when(pl.program_id(1) == 0)
    def _build_shifted():
        for kw in range(KW):
            xcat_ref[kw * Cin_pad:(kw + 1) * Cin_pad, :] = x_ref[0, :, kw:kw + Sv]

    # Conv as KH accumulating matmuls with K = KW*Cin_pad; kh*Wp is a static,
    # 128-aligned lane offset so these slices are free aligned views.
    acc = jnp.dot(w_ref[0], xcat_ref[:, 0:L], preferred_element_type=jnp.float32)
    for kh in range(1, KH):
        acc = acc + jnp.dot(w_ref[kh], xcat_ref[:, kh * Wp:kh * Wp + L],
                            preferred_element_type=jnp.float32)

    # Bias, then zero the halo columns once: they are cropped by the wrapper, and
    # zeroing here makes the GroupNorm sums below exact with no extra live temp.
    y = (acc + b_ref[...]) * mask_ref[...]              # (Cout_t, L) f32

    # Tile-local GroupNorm statistics (the Cout tile is a whole number of groups).
    s = jnp.sum(y, axis=1, keepdims=True)               # (Cout_t, 1)
    s2 = jnp.sum(y * y, axis=1, keepdims=True)          # (Cout_t, 1)
    gsum = jnp.dot(gmat_ref[...], s, preferred_element_type=jnp.float32)
    gsum2 = jnp.dot(gmat_ref[...], s2, preferred_element_type=jnp.float32)
    inv_n = 1.0 / group_count
    mean = gsum * inv_n
    var = jnp.maximum(gsum2 * inv_n - mean * mean, 0.0)
    inv = lax.rsqrt(var + eps)

    # Folded affine: yn = y*a + c; SiLU sigmoid goes to the EUP slot; store bf16.
    a = inv * gamma_ref[...]                             # (Cout_t, 1)
    c = beta_ref[...] - mean * a                         # (Cout_t, 1)
    yn = y * a + c
    out_ref[0] = (yn * jax.nn.sigmoid(yn)).astype(out_ref.dtype)


def cnn_block_forward(x, weight, bias, gamma, beta, num_groups, eps=1e-5,
                      out_dtype=jnp.bfloat16):
    """x: (N, Cin, H, W) NCHW; weight: (Cout, Cin, 3, 3) OIHW (PyTorch layout)."""
    N, Cin, H, W = x.shape
    Cout, _, KH, KW = weight.shape
    assert (KH, KW) == (3, 3)
    assert Cout % num_groups == 0
    cpg = Cout // num_groups

    # Lane-aligned row pitch: kh*Wp offsets and the output last dim H*Wp become
    # 128 multiples (aligned tap slices, unmasked lane-dense output stores).
    Wp = ((W + 2 + 127) // 128) * 128
    Hp = H + 3                       # 1 top halo row, 1 bottom halo row, 1 slack row
    S = Hp * Wp
    L = H * Wp                       # flat per-sample output length (halo cols kept)
    Sv = (H + 2) * Wp                # length of each kw-shifted view (covers all kh)
    Cin_pad = ((Cin + 7) // 8) * 8   # sublane-align the per-kw channel blocks

    # Cout tile = an integer number of GroupNorm groups (~128 channels), so the
    # statistics are tile-local and the grid iterates (N, Cout tiles).
    gpt = max(1, min(num_groups, max(1, 128 // cpg)))
    while num_groups % gpt != 0:
        gpt -= 1
    Cout_t = gpt * cpg
    num_ct = Cout // Cout_t

    # Halo pad + flatten spatial; bf16 for the MXU.
    xpad = jnp.pad(x, ((0, 0), (0, Cin_pad - Cin), (1, Hp - H - 1), (1, Wp - W - 1)))
    xflat = xpad.reshape(N, Cin_pad, S).astype(jnp.bfloat16)

    # Weights as (KH, Cout, KW*Cin_pad): columns ordered (kw, cin) to match the
    # kw-stacked activation scratch.
    wpad = jnp.pad(weight, ((0, 0), (0, Cin_pad - Cin), (0, 0), (0, 0)))
    wk = wpad.transpose(2, 0, 3, 1).reshape(KH, Cout, KW * Cin_pad).astype(jnp.bfloat16)

    b2 = bias.reshape(Cout, 1).astype(jnp.float32)
    g2 = gamma.reshape(Cout, 1).astype(jnp.float32)
    be2 = beta.reshape(Cout, 1).astype(jnp.float32)

    # Per-tile group membership matrix (identical for every tile) and valid mask.
    gid = jnp.arange(Cout_t) // cpg
    gmat = (gid[:, None] == gid[None, :]).astype(jnp.float32)        # (Cout_t, Cout_t)
    mask = (jnp.arange(L) % Wp < W).astype(jnp.float32).reshape(1, L)
    group_count = float(H * W * cpg)

    kern = functools.partial(cnn_block_kernel, KH=KH, KW=KW, Cin_pad=Cin_pad,
                             Wp=Wp, L=L, Sv=Sv, group_count=group_count, eps=eps)

    # VMEM budget: double-buffered per-step blocks + persistent scratch + f32
    # temporaries, with 1.5x headroom, capped at 85% of physical per-core VMEM.
    out_isize = jnp.dtype(out_dtype).itemsize
    est = (2 * (Cin_pad * S * 2 + KH * Cout_t * KW * Cin_pad * 2 + Cout_t * L * out_isize)
           + KW * Cin_pad * Sv * 2                       # kw-shifted activation scratch
           + 4 * Cout_t * L * 4                          # live f32 temporaries (bound)
           + (Cout_t * Cout_t + 4 * Cout_t + L) * 4)     # gmat / mask / channel vectors
    try:
        phys_vmem = pltpu.get_tpu_info().vmem_capacity_bytes
    except Exception:
        phys_vmem = 64 * 1024 * 1024
    vmem_limit = int(min(max(int(est * 1.5), 32 * 1024 * 1024), int(phys_vmem * 0.85)))

    invariant = {"pipeline_mode": pl.Buffered(1)} if _HAS_BUFFERED else {}

    out = pl.pallas_call(
        kern,
        out_shape=jax.ShapeDtypeStruct((N, Cout, L), out_dtype),
        grid=(N, num_ct),
        in_specs=[
            pl.BlockSpec((1, Cin_pad, S), lambda n, c: (n, 0, 0)),          # sample
            pl.BlockSpec((KH, Cout_t, KW * Cin_pad), lambda n, c: (0, c, 0)),
            pl.BlockSpec((Cout_t, 1), lambda n, c: (c, 0)),                 # conv bias
            pl.BlockSpec((Cout_t, 1), lambda n, c: (c, 0)),                 # GN gamma
            pl.BlockSpec((Cout_t, 1), lambda n, c: (c, 0)),                 # GN beta
            pl.BlockSpec((Cout_t, Cout_t), lambda n, c: (0, 0), **invariant),
            pl.BlockSpec((1, L), lambda n, c: (0, 0), **invariant),         # valid mask
        ],
        out_specs=pl.BlockSpec((1, Cout_t, L), lambda n, c: (n, c, 0)),
        scratch_shapes=[pltpu.VMEM((KW * Cin_pad, Sv), jnp.bfloat16)],
        compiler_params=pltpu.CompilerParams(
            # N is "parallel" (megacore); the Cout-tile axis carries the persistent
            # shifted-activation scratch, so it stays "arbitrary" (innermost).
            dimension_semantics=("parallel", "arbitrary"),
            vmem_limit_bytes=vmem_limit),
    )(xflat, wk, b2, g2, be2, gmat, mask)

    # Channels-first (NCHW) output with a lane-dense padded row pitch: just drop
    # the padded halo columns. TODO(synk): fuse this crop into the consumer.
    return out.reshape(N, Cout, H, Wp)[:, :, :, :W]


if __name__ == "__main__":
    key = jax.random.PRNGKey(0)
    N, Cin, H, W = 2, 4, 16, 16
    Cout = 8
    num_groups = 4 if Cout < 32 else 32

    k1, k2, k3, k4, k5 = jax.random.split(key, 5)
    x = jax.random.normal(k1, (N, Cin, H, W), jnp.float32)
    weight = 0.1 * jax.random.normal(k2, (Cout, Cin, 3, 3), jnp.float32)
    bias = 0.1 * jax.random.normal(k3, (Cout,), jnp.float32)
    gamma = 1.0 + 0.1 * jax.random.normal(k4, (Cout,), jnp.float32)
    beta = 0.1 * jax.random.normal(k5, (Cout,), jnp.float32)

    out = jax.block_until_ready(
        cnn_block_forward(x, weight, bias, gamma, beta, num_groups))
    out_f32 = out.astype(jnp.float32)

    # Pure-JAX reference (conv + GroupNorm + SiLU), with the same bf16 rounding of
    # the conv operands as the kernel's MXU path.
    xb = x.astype(jnp.bfloat16).astype(jnp.float32)
    wb = weight.astype(jnp.bfloat16).astype(jnp.float32)
    conv = lax.conv_general_dilated(
        xb, wb, window_strides=(1, 1), padding=((1, 1), (1, 1)),
        dimension_numbers=("NCHW", "OIHW", "NCHW")) + bias[None, :, None, None]
    cr = conv.reshape(N, num_groups, Cout // num_groups, H, W)
    mean = cr.mean(axis=(2, 3, 4), keepdims=True)
    var = cr.var(axis=(2, 3, 4), keepdims=True)
    yn = ((cr - mean) / jnp.sqrt(var + 1e-5)).reshape(N, Cout, H, W)
    yn = yn * gamma[None, :, None, None] + beta[None, :, None, None]
    ref = yn * jax.nn.sigmoid(yn)

    assert out.shape == (N, Cout, H, W)
    # Tolerance covers one bf16 rounding of the (bf16) kernel output vs f32 ref.
    assert jnp.allclose(out_f32, ref, atol=3e-2, rtol=3e-2), "mismatch vs reference"
    print("KERNEL_OK")
</pallas_src>

<mosaic_0001>
module attributes {stable_mosaic.version = 11 : i64} {
  func.func @cnn_block_kernel(%arg0: i32, %arg1: i32, %arg2: memref<1x8x2432xbf16, #tpu.memory_space<vmem>>, %arg3: memref<3x8x24xbf16, #tpu.memory_space<vmem>>, %arg4: memref<8x1xf32, #tpu.memory_space<vmem>>, %arg5: memref<8x1xf32, #tpu.memory_space<vmem>>, %arg6: memref<8x1xf32, #tpu.memory_space<vmem>>, %arg7: memref<8x8xf32, #tpu.memory_space<vmem>>, %arg8: memref<1x2048xf32, #tpu.memory_space<vmem>>, %arg9: memref<1x8x2048xbf16, #tpu.memory_space<vmem>>, %arg10: memref<24x2304xbf16, #tpu.memory_space<vmem>>) attributes {dimension_semantics = [#tpu.dimension_semantics<parallel>, #tpu.dimension_semantics<arbitrary>], iteration_bounds = array<i64: 2, 1>, scalar_prefetch = 0 : i64, scratch_operands = 1 : i64, tpu.core_type = #tpu.core_type<tc>, window_params = [{transform_indices = @transform_0, window_bounds = array<i64: 1, 8, 2432>}, {transform_indices = @transform_1, window_bounds = array<i64: 3, 8, 24>}, {transform_indices = @transform_2, window_bounds = array<i64: 8, 1>}, {transform_indices = @transform_3, window_bounds = array<i64: 8, 1>}, {transform_indices = @transform_4, window_bounds = array<i64: 8, 1>}, {pipeline_mode = #tpu.pipeline_mode<synchronous>, transform_indices = @transform_5, window_bounds = array<i64: 8, 8>}, {pipeline_mode = #tpu.pipeline_mode<synchronous>, transform_indices = @transform_6, window_bounds = array<i64: 1, 2048>}, {transform_indices = @transform_7, window_bounds = array<i64: 1, 8, 2048>}]} {
    %c0_i32 = arith.constant 0 : i32
    %0 = arith.cmpi eq, %arg1, %c0_i32 : i32
    %1 = arith.extui %0 : i1 to i32
    %c0_i32_0 = arith.constant 0 : i32
    %2 = arith.cmpi ne, %1, %c0_i32_0 : i32
    scf.if %2 {
      %c0_37 = arith.constant 0 : index
      %c0_38 = arith.constant 0 : index
      %c0_39 = arith.constant 0 : index
      %62 = vector.load %arg2[%c0_37, %c0_38, %c0_39] : memref<1x8x2432xbf16, #tpu.memory_space<vmem>>, vector<1x8x2304xbf16>
      %63 = vector.shape_cast %62 : vector<1x8x2304xbf16> to vector<8x2304xbf16>
      %c0_40 = arith.constant 0 : index
      %c0_41 = arith.constant 0 : index
      %64 = vector.load %arg10[%c0_40, %c0_41] : memref<24x2304xbf16, #tpu.memory_space<vmem>>, vector<8x2304xbf16>
      tpu.vector_store %arg10[%c0_40, %c0_41], %63 {strides = array<i32>} : memref<24x2304xbf16, #tpu.memory_space<vmem>>, vector<8x2304xbf16>,
      %c0_42 = arith.constant 0 : index
      %c0_43 = arith.constant 0 : index
      %c1_44 = arith.constant 1 : index
      %65 = vector.load %arg2[%c0_42, %c0_43, %c1_44] : memref<1x8x2432xbf16, #tpu.memory_space<vmem>>, vector<1x8x2304xbf16>
      %66 = vector.shape_cast %65 : vector<1x8x2304xbf16> to vector<8x2304xbf16>
      %c8 = arith.constant 8 : index
      %c0_45 = arith.constant 0 : index
      %67 = vector.load %arg10[%c8, %c0_45] : memref<24x2304xbf16, #tpu.memory_space<vmem>>, vector<8x2304xbf16>
      tpu.vector_store %arg10[%c8, %c0_45], %66 {strides = array<i32>} : memref<24x2304xbf16, #tpu.memory_space<vmem>>, vector<8x2304xbf16>,
      %c0_46 = arith.constant 0 : index
      %c0_47 = arith.constant 0 : index
      %c2_48 = arith.constant 2 : index
      %68 = vector.load %arg2[%c0_46, %c0_47, %c2_48] : memref<1x8x2432xbf16, #tpu.memory_space<vmem>>, vector<1x8x2304xbf16>
      %69 = vector.shape_cast %68 : vector<1x8x2304xbf16> to vector<8x2304xbf16>
      %c16 = arith.constant 16 : index
      %c0_49 = arith.constant 0 : index
      %70 = vector.load %arg10[%c16, %c0_49] : memref<24x2304xbf16, #tpu.memory_space<vmem>>, vector<8x2304xbf16>
      tpu.vector_store %arg10[%c16, %c0_49], %69 {strides = array<i32>} : memref<24x2304xbf16, #tpu.memory_space<vmem>>, vector<8x2304xbf16>,
    } else {
    }
    %c0 = arith.constant 0 : index
    %c0_1 = arith.constant 0 : index
    %c0_2 = arith.constant 0 : index
    %3 = vector.load %arg3[%c0, %c0_1, %c0_2] : memref<3x8x24xbf16, #tpu.memory_space<vmem>>, vector<1x8x24xbf16>
    %4 = vector.shape_cast %3 : vector<1x8x24xbf16> to vector<8x24xbf16>
    %c0_3 = arith.constant 0 : index
    %c0_4 = arith.constant 0 : index
    %5 = vector.load %arg10[%c0_3, %c0_4] : memref<24x2304xbf16, #tpu.memory_space<vmem>>, vector<24x2048xbf16>
    %cst = arith.constant dense<0.000000e+00> : vector<8x2048xf32>
    %6 = tpu.matmul %4, %5, %cst {dimension_numbers = #tpu.dot_dimension_numbers<[1], [0], [0], [1], [0, 0, 1, 1], [], []>} : vector<8x24xbf16>, vector<24x2048xbf16>, vector<8x2048xf32> -> vector<8x2048xf32>
    %c1 = arith.constant 1 : index
    %c0_5 = arith.constant 0 : index
    %c0_6 = arith.constant 0 : index
    %7 = vector.load %arg3[%c1, %c0_5, %c0_6] : memref<3x8x24xbf16, #tpu.memory_space<vmem>>, vector<1x8x24xbf16>
    %8 = vector.shape_cast %7 : vector<1x8x24xbf16> to vector<8x24xbf16>
    %c0_7 = arith.constant 0 : index
    %c128 = arith.constant 128 : index
    %9 = vector.load %arg10[%c0_7, %c128] : memref<24x2304xbf16, #tpu.memory_space<vmem>>, vector<24x2048xbf16>
    %cst_8 = arith.constant dense<0.000000e+00> : vector<8x2048xf32>
    %10 = tpu.matmul %8, %9, %cst_8 {dimension_numbers = #tpu.dot_dimension_numbers<[1], [0], [0], [1], [0, 0, 1, 1], [], []>} : vector<8x24xbf16>, vector<24x2048xbf16>, vector<8x2048xf32> -> vector<8x2048xf32>
    %11 = arith.addf %6, %10 : vector<8x2048xf32>
    %c2 = arith.constant 2 : index
    %c0_9 = arith.constant 0 : index
    %c0_10 = arith.constant 0 : index
    %12 = vector.load %arg3[%c2, %c0_9, %c0_10] : memref<3x8x24xbf16, #tpu.memory_space<vmem>>, vector<1x8x24xbf16>
    %13 = vector.shape_cast %12 : vector<1x8x24xbf16> to vector<8x24xbf16>
    %c0_11 = arith.constant 0 : index
    %c256 = arith.constant 256 : index
    %14 = vector.load %arg10[%c0_11, %c256] : memref<24x2304xbf16, #tpu.memory_space<vmem>>, vector<24x2048xbf16>
    %cst_12 = arith.constant dense<0.000000e+00> : vector<8x2048xf32>
    %15 = tpu.matmul %13, %14, %cst_12 {dimension_numbers = #tpu.dot_dimension_numbers<[1], [0], [0], [1], [0, 0, 1, 1], [], []>} : vector<8x24xbf16>, vector<24x2048xbf16>, vector<8x2048xf32> -> vector<8x2048xf32>
    %16 = arith.addf %11, %15 : vector<8x2048xf32>
    %c0_13 = arith.constant 0 : index
    %c0_14 = arith.constant 0 : index
    %17 = vector.load %arg4[%c0_13, %c0_14] : memref<8x1xf32, #tpu.memory_space<vmem>>, vector<8x1xf32>
    %18 = vector.broadcast %17 : vector<8x1xf32> to vector<8x2048xf32>
    %19 = arith.addf %16, %18 : vector<8x2048xf32>
    %c0_15 = arith.constant 0 : index
    %c0_16 = arith.constant 0 : index
    %20 = vector.load %arg8[%c0_15, %c0_16] : memref<1x2048xf32, #tpu.memory_space<vmem>>, vector<1x2048xf32>
    %21 = vector.broadcast %20 : vector<1x2048xf32> to vector<8x2048xf32>
    %22 = arith.mulf %19, %21 : vector<8x2048xf32>
    %cst_17 = arith.constant dense<0.000000e+00> : vector<8xf32>
    %23 = vector.multi_reduction <add>, %22, %cst_17 [1] : vector<8x2048xf32> to vector<8xf32>
    %24 = vector.shape_cast %23 : vector<8xf32> to vector<8x1xf32>
    %25 = arith.mulf %22, %22 : vector<8x2048xf32>
    %cst_18 = arith.constant dense<0.000000e+00> : vector<8xf32>
    %26 = vector.multi_reduction <add>, %25, %cst_18 [1] : vector<8x2048xf32> to vector<8xf32>
    %27 = vector.shape_cast %26 : vector<8xf32> to vector<8x1xf32>
    %c0_19 = arith.constant 0 : index
    %c0_20 = arith.constant 0 : index
    %28 = vector.load %arg7[%c0_19, %c0_20] : memref<8x8xf32, #tpu.memory_space<vmem>>, vector<8x8xf32>
    %cst_21 = arith.constant dense<0.000000e+00> : vector<8x1xf32>
    %29 = tpu.matmul %28, %24, %cst_21 {dimension_numbers = #tpu.dot_dimension_numbers<[1], [0], [0], [1], [0, 0, 1, 1], [], []>} : vector<8x8xf32>, vector<8x1xf32>, vector<8x1xf32> -> vector<8x1xf32>
    %c0_22 = arith.constant 0 : index
    %c0_23 = arith.constant 0 : index
    %30 = vector.load %arg7[%c0_22, %c0_23] : memref<8x8xf32, #tpu.memory_space<vmem>>, vector<8x8xf32>
    %cst_24 = arith.constant dense<0.000000e+00> : vector<8x1xf32>
    %31 = tpu.matmul %30, %27, %cst_24 {dimension_numbers = #tpu.dot_dimension_numbers<[1], [0], [0], [1], [0, 0, 1, 1], [], []>} : vector<8x8xf32>, vector<8x1xf32>, vector<8x1xf32> -> vector<8x1xf32>
    %cst_25 = arith.constant 0.001953125 : f32
    %32 = vector.broadcast %cst_25 : f32 to vector<8x1xf32>
    %33 = arith.mulf %29, %32 : vector<8x1xf32>
    %cst_26 = arith.constant 0.001953125 : f32
    %34 = vector.broadcast %cst_26 : f32 to vector<8x1xf32>
    %35 = arith.mulf %31, %34 : vector<8x1xf32>
    %36 = arith.mulf %33, %33 : vector<8x1xf32>
    %37 = arith.subf %35, %36 : vector<8x1xf32>
    %cst_27 = arith.constant 0.000000e+00 : f32
    %38 = vector.broadcast %cst_27 : f32 to vector<8x1xf32>
    %39 = arith.maximumf %37, %38 : vector<8x1xf32>
    %cst_28 = arith.constant 9.99999974E-6 : f32
    %40 = vector.broadcast %cst_28 : f32 to vector<8x1xf32>
    %41 = arith.addf %39, %40 : vector<8x1xf32>
    %42 = math.rsqrt %41 : vector<8x1xf32>
    %c0_29 = arith.constant 0 : index
    %c0_30 = arith.constant 0 : index
    %43 = vector.load %arg5[%c0_29, %c0_30] : memref<8x1xf32, #tpu.memory_space<vmem>>, vector<8x1xf32>
    %44 = arith.mulf %42, %43 : vector<8x1xf32>
    %c0_31 = arith.constant 0 : index
    %c0_32 = arith.constant 0 : index
    %45 = vector.load %arg6[%c0_31, %c0_32] : memref<8x1xf32, #tpu.memory_space<vmem>>, vector<8x1xf32>
    %46 = arith.mulf %33, %44 : vector<8x1xf32>
    %47 = arith.subf %45, %46 : vector<8x1xf32>
    %48 = vector.broadcast %44 : vector<8x1xf32> to vector<8x2048xf32>
    %49 = arith.mulf %22, %48 : vector<8x2048xf32>
    %50 = vector.broadcast %47 : vector<8x1xf32> to vector<8x2048xf32>
    %51 = arith.addf %49, %50 : vector<8x2048xf32>
    %52 = arith.negf %51 : vector<8x2048xf32>
    %53 = math.exp %52 : vector<8x2048xf32>
    %cst_33 = arith.constant 1.000000e+00 : f32
    %54 = vector.broadcast %cst_33 : f32 to vector<8x2048xf32>
    %55 = arith.addf %54, %53 : vector<8x2048xf32>
    %56 = arith.divf %54, %55 : vector<8x2048xf32>
    %57 = arith.mulf %51, %56 : vector<8x2048xf32>
    %58 = arith.truncf %57 : vector<8x2048xf32> to vector<8x2048xbf16>
    %c0_34 = arith.constant 0 : index
    %c0_35 = arith.constant 0 : index
    %c0_36 = arith.constant 0 : index
    %59 = vector.load %arg9[%c0_34, %c0_35, %c0_36] : memref<1x8x2048xbf16, #tpu.memory_space<vmem>>, vector<1x8x2048xbf16>
    %60 = vector.shape_cast %59 : vector<1x8x2048xbf16> to vector<8x2048xbf16>
    %61 = vector.shape_cast %58 : vector<8x2048xbf16> to vector<1x8x2048xbf16>
    tpu.vector_store %arg9[%c0_34, %c0_35, %c0_36], %61 {strides = array<i32>} : memref<1x8x2048xbf16, #tpu.memory_space<vmem>>, vector<1x8x2048xbf16>,
    return
  }
  func.func @transform_0(%arg0: i32, %arg1: i32) -> (i32, i32, i32) {
    %c0_i32 = arith.constant 0 : i32
    %c0_i32_0 = arith.constant 0 : i32
    %c0_i32_1 = arith.constant 0 : i32
    return %arg0, %c0_i32, %c0_i32_0 : i32, i32, i32
  }
  func.func @transform_1(%arg0: i32, %arg1: i32) -> (i32, i32, i32) {
    %c0_i32 = arith.constant 0 : i32
    %c0_i32_0 = arith.constant 0 : i32
    %c0_i32_1 = arith.constant 0 : i32
    return %c0_i32, %arg1, %c0_i32_0 : i32, i32, i32
  }
  func.func @transform_2(%arg0: i32, %arg1: i32) -> (i32, i32) {
    %c0_i32 = arith.constant 0 : i32
    %c0_i32_0 = arith.constant 0 : i32
    return %arg1, %c0_i32 : i32, i32
  }
  func.func @transform_3(%arg0: i32, %arg1: i32) -> (i32, i32) {
    %c0_i32 = arith.constant 0 : i32
    %c0_i32_0 = arith.constant 0 : i32
    return %arg1, %c0_i32 : i32, i32
  }
  func.func @transform_4(%arg0: i32, %arg1: i32) -> (i32, i32) {
    %c0_i32 = arith.constant 0 : i32
    %c0_i32_0 = arith.constant 0 : i32
    return %arg1, %c0_i32 : i32, i32
  }
  func.func @transform_5(%arg0: i32, %arg1: i32) -> (i32, i32) {
    %c0_i32 = arith.constant 0 : i32
    %c0_i32_0 = arith.constant 0 : i32
    %c0_i32_1 = arith.constant 0 : i32
    return %c0_i32, %c0_i32_0 : i32, i32
  }
  func.func @transform_6(%arg0: i32, %arg1: i32) -> (i32, i32) {
    %c0_i32 = arith.constant 0 : i32
    %c0_i32_0 = arith.constant 0 : i32
    %c0_i32_1 = arith.constant 0 : i32
    return %c0_i32, %c0_i32_0 : i32, i32
  }
  func.func @transform_7(%arg0: i32, %arg1: i32) -> (i32, i32, i32) {
    %c0_i32 = arith.constant 0 : i32
    %c0_i32_0 = arith.constant 0 : i32
    return %arg0, %arg1, %c0_i32 : i32, i32, i32
  }
}

</mosaic_0001>

<bundles_post_ra>
// kernel: tpu_custom_call.1
= control target key start
LH: loop header
LB: loop body
LE: loop exit
PB: predicated region body
PF: predicated region fallthrough
CT: control target
= control target key end

     0   :  { %12 = vsyncpa [#allocation4], 0  ;;  %s4312_s0 = inlined_call_operand.hbm [shape: bf16[2,8,2432], index: 0, kind: input, shape index: {}]   ;;  %s4313_s1 = inlined_call_operand.vmem [shape: bf16[3,8,24], index: 1, kind: input, shape index: {}]   ;;  %s4314_s2 = inlined_call_operand.vmem [shape: f32[8,1], index: 2, kind: input, shape index: {}]   ;;  %s4315_s3 = inlined_call_operand.vmem [shape: f32[8,1], index: 3, kind: input, shape index: {}]   ;;  %s4316_s4 = inlined_call_operand.vmem [shape: f32[8,1], index: 4, kind: input, shape index: {}]   ;;  %s4317_s5 = inlined_call_operand.vmem [shape: f32[8,8], index: 5, kind: input, shape index: {}]   ;;  %s4318_s6 = inlined_call_operand.vmem [shape: f32[1,2048], index: 6, kind: input, shape index: {}]   ;;  %s4319_s7 = inlined_call_operand.hbm [shape: bf16[2,8,2048], index: 7, kind: output, shape index: {}]  }
   0x1   :  { %14 = vsyncpa [#allocation4 + $0x1], 0 }
   0x2   :  { %15 = vsyncpa [#allocation5], 0 }
   0x3   :  { %17 = vsyncpa [#allocation5 + $0x1], 0  ;;  %s3426_s24 = smov 0   ;;  %s3428_s25 = smov 0  }
   0x4   :  { %s3430_s26 = smov 0   ;;  %s3432_s27 = smov 0  }
   0x5   :  { %s3434_s28 = smov 0   ;;  %s3436_s29 = smov 0  }
   0x6 LB: > { %4322 = sst [smem:[#allocation9_spill]] %s3373_s28  ;;  %s2880_s30 = sadd.s32 4294967295, %s3377_s29   ;;  %s3377_s29 = sphi %s3436_s29, %s23_s29   ;;  %s3373_s28 = sphi %s3434_s28, %s4332_s28   ;;  %s3369_s27 = sphi %s3432_s27, %s4331_s27   ;;  %s3365_s26 = sphi %s3430_s26, %s4335_s26   ;;  %s3361_s25 = sphi %s3428_s25, %s4334_s25   ;;  %s3357_s24 = sphi %s3426_s24, %s4333_s24  }
   0x7   : > { %s2881_s8 = sadd.s32 4294967294, %s3377_s29   ;;  %s35_s9 = sadd.s32 1, %s3373_s28 }
   0x8   : > { %s42_s10 = sadd.s32 1, %s3365_s26  ;;  %p37_p0 = scmp.ge.s32.totalorder %s35_s9, 2 }
   0x9   : > { %p49_p1 = scmp.ne.s32.totalorder %s3365_s26, %s3361_s25  ;;  %p50_p2 = scmp.eq.s32.totalorder %s3377_s29, 0 }
   0xa   : > { %p55_p3 = scmp.ne.s32.totalorder %s3361_s25, %s3357_s24  ;;  %s4337_s9 = smov (%p37_p0, %s35_s9), 0 }
   0xb   : > { %4323 = sst [smem:[#allocation10_spill]] %s4337_s9  ;;  %p3467_p4 = por %p50_p2, %p49_p1 }
   0xc   : > { %p56_p5 = scmp.eq.s32.totalorder %s2880_s30, 0  ;;  %s39_s12 = ssub.s32 %s3373_s28, %s4337_s9 }
   0xd   : > { %p227_p6 = scmp.eq.s32.totalorder %s2880_s30, 1  ;;  %p40_p7 = scmp.eq.s32.totalorder %s39_s12, 0 }
   0xe   : > { %p3473_p8 = por %p56_p5, %p55_p3  ;;  %p233_p10 = scmp.eq.s32.totalorder %s2881_s8, 1 }
   0xf   : > { %p3477_p9 = por %p227_p6, %p49_p1  ;;  %p3106_p13 = scmp.lt.s32.totalorder %s3377_s29, 2 }
  0x10   : > { %s3482_s15 = scalar_select %p40_p7, %s3365_s26, %s42_s10  }
  0x11   : > { %p3484_p11 = por %p233_p10, %p55_p3  ;;  %s287_s17 = sand.u32 1, %s3365_s26  }
  0x12   : > { %s3091_s18 = smul.u32 76, %s287_s17  ;;  %p3494_p0 = pnand %p3106_p13, %p3467_p4 }
  0x13   : > { %s4327_s16 = scalar_select %p3484_p11, 1, 0 }
  0x14   : > { %s3092_s19 = smul.u32 1216, %s3373_s28  ;;  %p2889_p1 = scmp.ge.s32.totalorder %s3377_s29, 1 }
  0x15   : > { %s291_s30 = scalar_lea.vmem [#allocation3], %s3091_s18  ;;  %s288_s10 = scalar_lea.sflag [#allocation4], %s287_s17 }
  0x16   : > { %s297_s23 = scalar_lea.hbm %s4312_s0, %s3092_s19  ;;  %s299_s8 = sshll.u32 %s291_s30, 4  ;;  %s300_s8 = int_to_ptr.vmem [resolvable:$true] %s299_s8 }
  0x17   : > { %p3271_p2 = pneg %p3494_p0  ;;  %s3282_s12 = scalar_lea.vmem %s300_s8, 1216 }
  0x18   : > { %p3283_p3 = scmp.ne.s32.totalorder %s300_s8, %s3282_s12  ;;  %s3379_s11 = smov [#allocation3]  }
  0x19   : > { %s3287_s9 = sshll.u32 %s3379_s11, 4  ;;  %s3288_s9 = int_to_ptr.vmem [resolvable:$false] %s3287_s9 }
  0x1a   : > { %p3285_p5 = pnand %p3283_p3, %p3271_p2  ;;  %s3289_s28 = scalar_lea.vmem %s3288_s9, 2432 }
  0x1b   : > { %p3290_p4 = scmp.lt.s32.totalorder %s300_s8, %s3288_s9  ;;  %p3291_p7 = scmp.lt.s32.totalorder %s3289_s28, %s3282_s12 }
  0x1c   : > { %p3286_p6 = pneg %p3285_p5 }
  0x1d   : > { %p3292_p10 = por %p3291_p7, %p3290_p4 }
  0x1f   : > { %p3293_p13 = pnand %p3292_p10, %p3286_p6 }
  0x21   : > { %3296 = shalt.err (!%p3293_p13)
}
  0x22   : > { %3101 = dma.hbm_to_vmem [thread:$0]  (!%p3494_p0), %s297_s23, 1216, %s300_s8, %s288_s10  }
  0x23   : > { %p304_p12 = scmp.lt.s32.totalorder %s3377_s29, 3 }
  0x25   : > { %p305_p11 = pnand %p2889_p1, %p304_p12 }
  0x26   : > { %s3510_s17 = sand.u32 (!%p305_p11), 1, %s3361_s25  }
  0x27   : > { %308 = sbr.rel (%p305_p11) target bundleno = 1039 (0x40f), region = 48  ;;  %s311_s28 = scalar_lea.sflag (!%p305_p11), [#allocation4], %s3510_s17 }
  0x28   : > { %s3093_s9 = smul.u32 (!%p305_p11), 76, %s3510_s17 }
  0x2a   : > { %s3514_s18 = scalar_lea.vmem (!%p305_p11), [#allocation3], %s3093_s9 }
  0x2c   : > { %3348 = dma.done.wait (%p3473_p8), %s311_s28, 1216  }
  0x2d   : > { %3350 = vsyncadd (%p3473_p8), %s311_s28, 4294966080  ;;  %v3521_v0 = vld [vmem:[%s3514_s18 + $0x10] sm:$0xff]  ;;  %v3524_v1 = vld [vmem:[%s3514_s18] sm:$0xff]  ;;  %s3380_s19 = smov 126   ;;  %s3381_s13 = smov 127   ;;  %v3382_v9 = vmov 0  }
  0x2e   : > { %v3527_v2 = vld [vmem:[%s3514_s18 + $0x8] sm:$0xff]  ;;  %512 = vrot.lane.b32.xlu1 %v3521_v0, %s3380_s19  ;;  %508 = vrot.lane.b32.xlu0 %v3524_v1, %s3380_s19  ;;  %v3534_v3 = vld [vmem:[%s3514_s18 + $0x18] sm:$0xff]  ;;  %391 = vst [vmem:[#allocation2] sm:$0xff] %v3524_v1  ;;  %393 = vst [vmem:[#allocation2 + $0x10] sm:$0xff] %v3521_v0  ;;  %vm450_vm0 = vcmask 1043456   ;;  %vm539_vm1 = vcmask 1031168  }
  0x2f   : > { %v3537_v4 = vld [vmem:[%s3514_s18 + $0x20] sm:$0xff]  ;;  %392 = vst [vmem:[#allocation2 + $0x8] sm:$0xff] %v3527_v2  ;;  %v3543_v5 = vld [vmem:[%s3514_s18 + $0x28] sm:$0xff]  ;;  %v3546_v6 = vld [vmem:[%s3514_s18 + $0x30] sm:$0xff]  ;;  %831 = vmatprep.mubr.bf16.mxu0 %v3382_v9  ;;  %872 = vmatprep.mubr.bf16.mxu1 %v3382_v9  ;;  %vm452_vm2 = vcmask 1039360   ;;  %vm746_vm3 = vcmask 195584  }
  0x30   : > { %v3549_v7 = vld [vmem:[%s3514_s18 + $0x38] sm:$0xff]  ;;  %394 = vst [vmem:[#allocation2 + $0x18] sm:$0xff] %v3534_v3  ;;  %395 = vst [vmem:[#allocation2 + $0x20] sm:$0xff] %v3537_v4  ;;  %v3554_v8 = vld [vmem:[%s3514_s18 + $0x40] sm:$0xff]  ;;  %3161 = vset.pattern.permute.xlu0 %v3382_v9  ;;  %3162 = vset.pattern.permute.xlu1 %v3382_v9  ;;  %vm3384_vm4 = vmmov 0   ;;  %vm2340_vm5 = vcmask 64512  }
  0x31   : > { %396 = vst [vmem:[#allocation2 + $0x28] sm:$0xff] %v3543_v5  ;;  %397 = vst [vmem:[#allocation2 + $0x30] sm:$0xff] %v3546_v6  ;;  %v497_v10 = vld [vmem:[%s3514_s18 + $0x48] sm:$0xf]  ;;  %s2890_s30 = sshll.u32 %s3510_s17, 6  ;;  %s3076_s10 = sshll.u32 %s3369_s27, 10 }
  0x32   : > { %398 = vst [vmem:[#allocation2 + $0x38] sm:$0xff] %v3549_v7  ;;  %399 = vst [vmem:[#allocation2 + $0x40] sm:$0xff] %v3554_v8  ;;  %510 = vrot.lane.b32.xlu0 %v3527_v2, %s3380_s19  ;;  %420 = vrot.lane.b32.xlu1 %v3524_v1, %s3381_s13  ;;  %v409_v11 = vld [vmem:[%s3514_s18 + $0x48] sm:$0xf]  ;;  %s4251_s8 = scalar_lea.vmem [#allocation6], %s2890_s30  ;;  %s2737_s28 = scalar_lea.hbm %s4319_s7, %s3076_s10 }
  0x33   : > { %v2167_v12 = vld [vmem:[%s4314_s2] sm:$0xff]  ;;  %s2739_s12 = sshll.u32 %s4251_s8, 4  ;;  %s2723_s18 = scalar_lea.sflag [#allocation5], %s3510_s17  ;;  %s2740_s12 = int_to_ptr.vmem [resolvable:$true] %s2739_s12 }
  0x34   : > { %s3385_s27 = smov [#allocation6]  }
  0x36   : > { %422 = vrot.lane.b32.xlu0 %v3527_v2, %s3381_s13  ;;  %424 = vrot.lane.b32.xlu1 %v3521_v0, %s3381_s13 }
  0x3a   : > { %514 = vrot.lane.b32.xlu0 %v3534_v3, %s3380_s19  ;;  %426 = vrot.lane.b32.xlu1 %v3534_v3, %s3381_s13 }
  0x3e   : > { %516 = vrot.lane.b32.xlu0 %v3537_v4, %s3380_s19  ;;  %428 = vrot.lane.b32.xlu1 %v3537_v4, %s3381_s13 }
  0x42   : > { %518 = vrot.lane.b32.xlu0 %v3543_v5, %s3380_s19  ;;  %430 = vrot.lane.b32.xlu1 %v3543_v5, %s3381_s13 }
  0x46   : > { %520 = vrot.lane.b32.xlu0 %v3546_v6, %s3380_s19  ;;  %432 = vrot.lane.b32.xlu1 %v3546_v6, %s3381_s13 }
  0x4a   : > { %522 = vrot.lane.b32.xlu0 %v3549_v7, %s3380_s19  ;;  %434 = vrot.lane.b32.xlu1 %v3549_v7, %s3381_s13 }
  0x4e   : > { %524 = vrot.lane.b32.xlu0 %v3554_v8, %s3380_s19  ;;  %436 = vrot.lane.b32.xlu1 %v3554_v8, %s3381_s13 }
  0x52   : > { %526 = vrot.lane.b32.xlu0 %v497_v10, %s3380_s19  ;;  %438 = vrot.lane.b32.xlu1 %v409_v11, %s3381_s13  ;;  %v3646_v11 = vld [vmem:[%s4313_s1 + $0x4] sm:$0xf]  ;;  %s3297_s19 = scalar_lea.vmem %s2740_s12, 1024  ;;  %s3301_s13 = sshll.u32 %s3385_s27, 4  ;;  %s3302_s13 = int_to_ptr.vmem [resolvable:$false] %s3301_s13 }
  0x53   : > { %p3298_p8 = scmp.ne.s32.totalorder %s2740_s12, %s3297_s19  ;;  %s3303_s20 = scalar_lea.vmem %s3302_s13, 2048 }
  0x54   : > { %p3304_p0 = scmp.lt.s32.totalorder %s2740_s12, %s3302_s13  ;;  %p3305_p1 = scmp.lt.s32.totalorder %s3303_s20, %s3297_s19 }
  0x55   : > { %p3299_p11 = pnand %p3298_p8, %p3477_p9 }
  0x56   : > { %2170 = vperm.xlu0 %3161, %v2167_v12   ;;  %p3306_p2 = por %p3305_p1, %p3304_p0 }
  0x57   : > { %p3300_p12 = pneg %p3299_p11 }
  0x59   : > { %p3307_p3 = pnand %p3306_p2, %p3300_p12 }
  0xa0   : > { %v513_v13 = vpop.permute.xlu1 %512  ;;  %v509_v14 = vpop.permute.xlu0 %508 }
  0xa1   : > { %v530_v15 = vrot.slane %v513_v13, 4  ;;  %v528_v18 = vrot.slane %v509_v14, 4 }
  0xa4   : > { %v511_v16 = vpop.permute.xlu0 %510  ;;  %v421_v17 = vpop.permute.xlu1 %420 }
  0xa5   : > { %v529_v19 = vrot.slane %v511_v16, 4  ;;  %v440_v22 = vrot.slane %v421_v17, 4 }
  0xa7   : > { %v538_v20 = vsel %vm450_vm0, %v528_v18, %v529_v19  ;;  %v541_v21 = vsel %vm450_vm0, %v529_v19, %v530_v15 }
  0xa8   : > { %v3596_v23 = vsel %vm539_vm1, %v509_v14, %v538_v20  ;;  %v3599_v24 = vsel %vm539_vm1, %v511_v16, %v541_v21  ;;  %v423_v25 = vpop.permute.xlu0 %422  ;;  %v425_v26 = vpop.permute.xlu1 %424 }
  0xa9   : > { %566 = vst [vmem:[#allocation2 + $0x90] sm:$0xff] %v3596_v23  ;;  %567 = vst [vmem:[#allocation2 + $0x98] sm:$0xff] %v3599_v24  ;;  %v441_v27 = vrot.slane %v423_v25, 4  ;;  %v442_v28 = vrot.slane %v425_v26, 4 }
  0xab   : > { %v451_v29 = vsel %vm450_vm0, %v440_v22, %v441_v27  ;;  %v454_v30 = vsel %vm450_vm0, %v441_v27, %v442_v28 }
  0xac   : > { %v3606_v31 = vsel %vm452_vm2, %v421_v17, %v451_v29  ;;  %v3609_v32 = vsel %vm452_vm2, %v423_v25, %v454_v30  ;;  %v515_v33 = vpop.permute.xlu0 %514  ;;  %v427_v34 = vpop.permute.xlu1 %426 }
  0xad   : > { %479 = vst [vmem:[#allocation2 + $0x48] sm:$0xff] %v3606_v31  ;;  %480 = vst [vmem:[#allocation2 + $0x50] sm:$0xff] %v3609_v32  ;;  %v531_v35 = vrot.slane %v515_v33, 4  ;;  %v443_v36 = vrot.slane %v427_v34, 4 }
  0xaf   : > { %v543_v37 = vsel %vm450_vm0, %v530_v15, %v531_v35  ;;  %v456_v38 = vsel %vm450_vm0, %v442_v28, %v443_v36 }
  0xb0   : > { %v3616_v39 = vsel %vm539_vm1, %v513_v13, %v543_v37  ;;  %v3619_v40 = vsel %vm452_vm2, %v425_v26, %v456_v38  ;;  %v517_v41 = vpop.permute.xlu0 %516  ;;  %v429_v42 = vpop.permute.xlu1 %428  ;;  %v618_v43 = vld [vmem:[#allocation2 + $0x94] sm:$0xff] }
  0xb1   : > { %568 = vst [vmem:[#allocation2 + $0xa0] sm:$0xff] %v3616_v39  ;;  %481 = vst [vmem:[#allocation2 + $0x58] sm:$0xff] %v3619_v40  ;;  %v532_v44 = vrot.slane %v517_v41, 4  ;;  %v444_v45 = vrot.slane %v429_v42, 4  ;;  %v2909_v46 = vcombine.high %v618_v43, %v618_v43  ;;  %v2908_v47 = vcombine.low %v618_v43, %v618_v43 }
  0xb3   : > { %v545_v48 = vsel %vm450_vm0, %v531_v35, %v532_v44  ;;  %v458_v49 = vsel %vm450_vm0, %v443_v36, %v444_v45  ;;  %2924 = vmatprep.subr.msk.bf16.mxu0 %vm450_vm0, %v2909_v46  ;;  %v752_v50 = vsel %vm450_vm0, %v2908_v47, 0 }
  0xb4   : > { %v3628_v51 = vsel %vm539_vm1, %v515_v33, %v545_v48  ;;  %v3631_v52 = vsel %vm452_vm2, %v427_v34, %v458_v49  ;;  %812 = vmatpush1.bf16.msra.mxu0 %v752_v50  ;;  %v519_v53 = vpop.permute.xlu0 %518  ;;  %v431_v54 = vpop.permute.xlu1 %430  ;;  %v3165_v55 = vld [vmem:[#allocation2 + $0x8] ss:$72 sps:$4 sm:$0xff]   ;;  %v3167_v58 = vld [vmem:[#allocation2 + $0x4] ss:$72 sps:$4 sm:$0xff]  }
  0xb5   : > { %569 = vst [vmem:[#allocation2 + $0xa8] sm:$0xff] %v3628_v51  ;;  %482 = vst [vmem:[#allocation2 + $0x60] sm:$0xff] %v3631_v52  ;;  %v533_v56 = vrot.slane %v519_v53, 4  ;;  %v445_v57 = vrot.slane %v431_v54, 4  ;;  %813 = vmatprep.subr.bf16.mxu0 %v3165_v55  ;;  %v3173_v34 = vld [vmem:[#allocation2 + $0xc] ss:$72 sps:$4 sm:$0xff]  }
  0xb7   : > { %v547_v59 = vsel %vm450_vm0, %v532_v44, %v533_v56  ;;  %v460_v60 = vsel %vm450_vm0, %v444_v45, %v445_v57 }
  0xb8   : > { %v3638_v61 = vsel %vm539_vm1, %v517_v41, %v547_v59  ;;  %v3641_v62 = vsel %vm452_vm2, %v429_v42, %v460_v60  ;;  %v521_v63 = vpop.permute.xlu0 %520  ;;  %v433_v10 = vpop.permute.xlu1 %432  ;;  %814 = vmatpush1.bf16.msra.mxu0 %v3167_v58  ;;  %v619_v12 = vld [vmem:[#allocation2 + $0x9c] sm:$0xff]  ;;  %v3170_v20 = vld [vmem:[#allocation2 + $0x10] ss:$72 sps:$4 sm:$0xff]  }
  0xb9   : > { %570 = vst [vmem:[#allocation2 + $0xb0] sm:$0xff] %v3638_v61  ;;  %483 = vst [vmem:[#allocation2 + $0x68] sm:$0xff] %v3641_v62  ;;  %v534_v13 = vrot.slane %v521_v63, 4  ;;  %v446_v14 = vrot.slane %v433_v10, 4  ;;  %v2911_v15 = vcombine.high %v619_v12, %v619_v12  ;;  %v2910_v16 = vcombine.low %v619_v12, %v619_v12  ;;  %v3175_v50 = vld [vmem:[#allocation2 + $0x14] ss:$72 sps:$4 sm:$0xff]  }
  0xbb   : > { %v549_v17 = vsel %vm450_vm0, %v533_v56, %v534_v13  ;;  %v462_v18 = vsel %vm450_vm0, %v445_v57, %v446_v14  ;;  %2925 = vmatmul.mubr.msk.bf16.vlgmr.msra.gmra.mxu0 %vm746_vm3, %v3646_v11  ;;  %2926 = vmatprep.subr.msk.bf16.mxu1 %vm450_vm0, %v2911_v15  ;;  %v758_v19 = vsel %vm450_vm0, %v2910_v16, 0 }
  0xbc   : > { %v3657_v21 = vsel %vm539_vm1, %v519_v53, %v549_v17  ;;  %v3660_v22 = vsel %vm452_vm2, %v431_v54, %v462_v18  ;;  %853 = vmatpush1.bf16.msra.mxu1 %v758_v19  ;;  %v523_v25 = vpop.permute.xlu0 %522  ;;  %v435_v26 = vpop.permute.xlu1 %434  ;;  %v620_v27 = vld [vmem:[#allocation2 + $0xa4] sm:$0xff]  ;;  %913 = vmatprep.mubr.bf16.mxu0 %v3382_v9  ;;  %v3177_v38 = vld [vmem:[#allocation2 + $0x18] ss:$72 sps:$4 sm:$0xff]  }
  0xbd   : > { %571 = vst [vmem:[#allocation2 + $0xb8] sm:$0xff] %v3657_v21  ;;  %484 = vst [vmem:[#allocation2 + $0x70] sm:$0xff] %v3660_v22  ;;  %v535_v28 = vrot.slane %v523_v25, 4  ;;  %v447_v29 = vrot.slane %v435_v26, 4  ;;  %854 = vmatprep.subr.bf16.mxu1 %v3170_v20  ;;  %v2913_v30 = vcombine.high %v620_v27, %v620_v27  ;;  %v2912_v33 = vcombine.low %v620_v27, %v620_v27  ;;  %v3180_v15 = vld [vmem:[#allocation2 + $0x1c] ss:$72 sps:$4 sm:$0xff]  }
  0xbf   : > { %v551_v35 = vsel %vm450_vm0, %v534_v13, %v535_v28  ;;  %v464_v36 = vsel %vm450_vm0, %v446_v14, %v447_v29  ;;  %2928 = vmatprep.subr.msk.bf16.mxu0 %vm450_vm0, %v2913_v30  ;;  %v764_v37 = vsel %vm450_vm0, %v2912_v33, 0 }
  0xc0   : > { %v3670_v41 = vsel %vm539_vm1, %v521_v63, %v551_v35  ;;  %v3673_v42 = vsel %vm452_vm2, %v433_v10, %v464_v36  ;;  %v525_v43 = vpop.permute.xlu0 %524  ;;  %v437_v44 = vpop.permute.xlu1 %436  ;;  %855 = vmatpush1.bf16.msra.mxu1 %v3173_v34  ;;  %894 = vmatpush1.bf16.msra.mxu0 %v764_v37  ;;  %v621_v45 = vld [vmem:[#allocation2 + $0xac] sm:$0xff]  ;;  %v3182_v56 = vld [vmem:[#allocation2 + $0x20] ss:$72 sps:$4 sm:$0xff]  }
  0xc1   : > { %572 = vst [vmem:[#allocation2 + $0xc0] sm:$0xff] %v3670_v41  ;;  %485 = vst [vmem:[#allocation2 + $0x78] sm:$0xff] %v3673_v42  ;;  %v536_v46 = vrot.slane %v525_v43, 4  ;;  %v448_v47 = vrot.slane %v437_v44, 4  ;;  %895 = vmatprep.subr.bf16.mxu0 %v3177_v38  ;;  %v2915_v48 = vcombine.high %v621_v45, %v621_v45  ;;  %v2914_v49 = vcombine.low %v621_v45, %v621_v45 }
  0xc3   : > { %v553_v53 = vsel %vm450_vm0, %v535_v28, %v536_v46  ;;  %v466_v54 = vsel %vm450_vm0, %v447_v29, %v448_v47  ;;  %2927 = vmatmul.mubr.msk.bf16.vlgmr.msra.gmra.mxu1 %vm746_vm3, %v3646_v11  ;;  %2930 = vmatprep.subr.msk.bf16.mxu1 %vm450_vm0, %v2915_v48  ;;  %v770_v55 = vsel %vm450_vm0, %v2914_v49, 0  ;;  %v3185_v29 = vld [vmem:[#allocation2 + $0x24] ss:$72 sps:$4 sm:$0xff]  }
  0xc4   : > { %v3684_v57 = vsel %vm539_vm1, %v523_v25, %v553_v53  ;;  %v3687_v58 = vsel %vm452_vm2, %v435_v26, %v466_v54  ;;  %v527_v59 = vpop.permute.xlu0 %526  ;;  %v439_v60 = vpop.permute.xlu1 %438  ;;  %896 = vmatpush1.bf16.msra.mxu0 %v3175_v50  ;;  %935 = vmatpush1.bf16.msra.mxu1 %v770_v55  ;;  %v622_v63 = vld [vmem:[#allocation2 + $0xb4] sm:$0xff]  ;;  %v3187_v19 = vld [vmem:[#allocation2 + $0x28] ss:$72 sps:$4 sm:$0xff]   ;;  %v2957_v50 = vcombine.high %v3596_v23, %v3596_v23 }
  0xc5   : > { %573 = vst [vmem:[#allocation2 + $0xc8] sm:$0xff] %v3684_v57  ;;  %486 = vst [vmem:[#allocation2 + $0x80] sm:$0xff] %v3687_v58  ;;  %v537_v10 = vrot.slane %v527_v59, 4  ;;  %v449_v12 = vrot.slane %v439_v60, 4  ;;  %936 = vmatprep.subr.bf16.mxu1 %v3182_v56  ;;  %v2917_v13 = vcombine.high %v622_v63, %v622_v63  ;;  %v2916_v14 = vcombine.low %v622_v63, %v622_v63  ;;  %v3190_v37 = vld [vmem:[#allocation2 + $0x2c] ss:$72 sps:$4 sm:$0xff]  }
  0xc6   : > { %954 = vmatprep.mubr.bf16.mxu1 %v3382_v9  ;;  %v2956_v53 = vcombine.low %v3596_v23, %v3596_v23  ;;  %v2941_v56 = vcombine.high %v3524_v1, %v3606_v31  ;;  %v3734_v59 = vcombine.high %v3599_v24, %v3599_v24  ;;  %v2958_v23 = vcombine.low %v3599_v24, %v3599_v24 }
  0xc7   : > { %v555_v16 = vsel %vm450_vm0, %v536_v46, %v537_v10  ;;  %v468_v17 = vsel %vm450_vm0, %v448_v47, %v449_v12  ;;  %2929 = vmatmul.mubr.msk.bf16.vlgmr.msra.gmra.mxu0 %vm746_vm3, %v3646_v11  ;;  %2932 = vmatprep.subr.msk.bf16.mxu0 %vm450_vm0, %v2917_v13  ;;  %v776_v18 = vsel %vm450_vm0, %v2916_v14, 0  ;;  %v2940_v60 = vcombine.low %v3524_v1, %v3606_v31  ;;  %v3762_v1 = vld [vmem:[%s4313_s1] sm:$0xf] }
  0xc8   : > { %v3699_v20 = vsel %vm539_vm1, %v525_v43, %v555_v16  ;;  %v3702_v25 = vsel %vm452_vm2, %v437_v44, %v468_v17  ;;  %937 = vmatpush1.bf16.msra.mxu1 %v3180_v15  ;;  %976 = vmatpush1.bf16.msra.mxu0 %v776_v18  ;;  %v623_v26 = vld [vmem:[#allocation2 + $0xbc] sm:$0xff]  ;;  %v3192_v33 = vld [vmem:[#allocation2 + $0x30] ss:$72 sps:$4 sm:$0xff]   ;;  %v1251_v55 = vsel %vm450_vm0, %v2956_v53, 0  ;;  %v3746_v63 = vsel %vm450_vm0, %v2958_v23, 0 }
  0xc9   : > { %574 = vst [vmem:[#allocation2 + $0xd0] sm:$0xff] %v3699_v20  ;;  %487 = vst [vmem:[#allocation2 + $0x88] sm:$0xff] %v3702_v25  ;;  %977 = vmatprep.subr.bf16.mxu0 %v3187_v19  ;;  %v2919_v27 = vcombine.high %v623_v26, %v623_v26  ;;  %v2918_v28 = vcombine.low %v623_v26, %v623_v26  ;;  %995 = vmatprep.mubr.bf16.mxu0 %v3382_v9  ;;  %v3195_v47 = vld [vmem:[#allocation2 + $0x34] ss:$72 sps:$4 sm:$0xff]  }
  0xca   : > { %v3750_v24 = vcombine.high %v3527_v2, %v3609_v32  ;;  %v3754_v10 = vcombine.high %v3616_v39, %v3616_v39  ;;  %v2960_v12 = vcombine.low %v3616_v39, %v3616_v39  ;;  %v3769_v31 = vcombine.low %v3527_v2, %v3609_v32 }
  0xcb   : > { %2931 = vmatmul.mubr.msk.bf16.vlgmr.msra.gmra.mxu1 %vm746_vm3, %v3646_v11  ;;  %2934 = vmatprep.subr.msk.bf16.mxu1 %vm450_vm0, %v2919_v27  ;;  %v782_v30 = vsel %vm450_vm0, %v2918_v28, 0  ;;  %v3783_v13 = vcombine.high %v3628_v51, %v3628_v51  ;;  %v2962_v2 = vcombine.low %v3628_v51, %v3628_v51  ;;  %v3794_v32 = vcombine.low %v3521_v0, %v3619_v40 }
  0xcc   : > { %978 = vmatpush1.bf16.msra.mxu0 %v3185_v29  ;;  %1017 = vmatpush1.bf16.msra.mxu1 %v782_v30  ;;  %v624_v34 = vld [vmem:[#allocation2 + $0xc4] sm:$0xff]  ;;  %v3197_v43 = vld [vmem:[#allocation2 + $0x38] ss:$72 sps:$4 sm:$0xff]   ;;  %v3775_v39 = vsel %vm450_vm0, %v2960_v12, 0  ;;  %v3804_v14 = vcombine.high %v3534_v3, %v3631_v52  ;;  %v3808_v15 = vcombine.high %v3638_v61, %v3638_v61  ;;  %v2949_v16 = vcombine.high %v3537_v4, %v3641_v62 }
  0xcd   : > { %1018 = vmatprep.subr.bf16.mxu1 %v3192_v33  ;;  %v2921_v35 = vcombine.high %v624_v34, %v624_v34  ;;  %v2920_v36 = vcombine.low %v624_v34, %v624_v34  ;;  %1036 = vmatprep.mubr.bf16.mxu1 %v3382_v9  ;;  %v3200_v54 = vld [vmem:[#allocation2 + $0x3c] ss:$72 sps:$4 sm:$0xff]   ;;  %v3800_v51 = vsel %vm450_vm0, %v2962_v2, 0  ;;  %v2967_v17 = vcombine.high %v3657_v21, %v3657_v21 }
  0xce   : > { %v2966_v18 = vcombine.low %v3657_v21, %v3657_v21  ;;  %v2951_v19 = vcombine.high %v3543_v5, %v3660_v22  ;;  %v2969_v21 = vcombine.high %v3670_v41, %v3670_v41  ;;  %v2968_v26 = vcombine.low %v3670_v41, %v3670_v41 }
  0xcf   : > { %2933 = vmatmul.mubr.msk.bf16.vlgmr.msra.gmra.mxu0 %vm746_vm3, %v3646_v11  ;;  %2936 = vmatprep.subr.msk.bf16.mxu0 %vm450_vm0, %v2921_v35  ;;  %v788_v38 = vsel %vm450_vm0, %v2920_v36, 0  ;;  %v2953_v27 = vcombine.high %v3546_v6, %v3673_v42  ;;  %v2971_v41 = vcombine.high %v3684_v57, %v3684_v57  ;;  %v2970_v28 = vcombine.low %v3684_v57, %v3684_v57 }
  0xd0   : > { %1019 = vmatpush1.bf16.msra.mxu1 %v3190_v37  ;;  %1058 = vmatpush1.bf16.msra.mxu0 %v788_v38  ;;  %v625_v44 = vld [vmem:[#allocation2 + $0xcc] sm:$0xff]  ;;  %v3202_v49 = vld [vmem:[#allocation2 + $0x40] ss:$72 sps:$4 sm:$0xff]   ;;  %v2955_v29 = vcombine.high %v3549_v7, %v3687_v58  ;;  %v2954_v57 = vcombine.low %v3549_v7, %v3687_v58  ;;  %v3020_v7 = vcombine.high %v3699_v20, %v3699_v20  ;;  %v3383_v33 = vmov 0.0  }
  0xd1   : > { %1059 = vmatprep.subr.bf16.mxu0 %v3197_v43  ;;  %v2923_v45 = vcombine.high %v625_v44, %v625_v44  ;;  %v2922_v46 = vcombine.low %v625_v44, %v625_v44  ;;  %1077 = vmatprep.mubr.bf16.mxu0 %v3382_v9  ;;  %v3004_v30 = vcombine.high %v3554_v8, %v3702_v25 }
  0xd3   : > { %2935 = vmatmul.mubr.msk.bf16.vlgmr.msra.gmra.mxu1 %vm746_vm3, %v3646_v11  ;;  %2938 = vmatprep.subr.msk.bf16.mxu1 %vm450_vm0, %v2923_v45  ;;  %v794_v48 = vsel %vm450_vm0, %v2922_v46, 0 }
  0xd4   : > { %1060 = vmatpush1.bf16.msra.mxu0 %v3195_v47  ;;  %1099 = vmatpush1.bf16.msra.mxu1 %v794_v48 }
  0xd5   : > { %1100 = vmatprep.subr.bf16.mxu1 %v3202_v49  ;;  %2972 = vmatprep.subr.msk.bf16.mxu0 %vm450_vm0, %v2957_v50 }
  0xd6   : > { %1118 = vmatprep.mubr.bf16.mxu1 %v3382_v9 }
  0xd7   : > { %2937 = vmatmul.mubr.msk.bf16.vlgmr.msra.gmra.mxu0 %vm746_vm3, %v3646_v11 }
  0xd8   : > { %1101 = vmatpush1.bf16.msra.mxu1 %v3200_v54  ;;  %1311 = vmatpush1.bf16.msra.mxu0 %v1251_v55 }
  0xd9   : > { %1312 = vmatprep.subr.bf16.mxu0 %v2941_v56  ;;  %2974 = vmatprep.subr.msk.bf16.mxu1 %vm450_vm0, %v3734_v59 }
  0xda   : > { %1330 = vmatprep.mubr.bf16.mxu0 %v3382_v9 }
  0xdb   : > { %2939 = vmatmul.mubr.msk.bf16.vlgmr.msra.gmra.mxu1 %vm746_vm3, %v3646_v11  ;;  %v3779_v11 = vcombine.high %v3521_v0, %v3619_v40  ;;  %v2964_v0 = vcombine.low %v3638_v61, %v3638_v61  ;;  %v3819_v40 = vcombine.low %v3534_v3, %v3631_v52  ;;  %v2948_v3 = vcombine.low %v3537_v4, %v3641_v62 }
  0xdc   : > { %1313 = vmatpush1.bf16.msra.mxu0 %v2940_v60  ;;  %1352 = vmatpush1.bf16.msra.mxu1 %v3746_v63  ;;  %v1281_v52 = vsel %vm450_vm0, %v2966_v18, 0  ;;  %v2950_v4 = vcombine.low %v3543_v5, %v3660_v22  ;;  %v1287_v62 = vsel %vm450_vm0, %v2968_v26, 0  ;;  %v2952_v5 = vcombine.low %v3546_v6, %v3673_v42  ;;  %v2988_v6 = vld [vmem:[%s4313_s1 + $0x8] sm:$0xf] }
  0xdd   : > { %1353 = vmatprep.subr.bf16.mxu1 %v3750_v24  ;;  %2976 = vmatprep.subr.msk.bf16.mxu0 %vm450_vm0, %v3754_v10  ;;  %v1275_v61 = vsel %vm450_vm0, %v2964_v0, 0  ;;  %v1293_v22 = vsel %vm450_vm0, %v2970_v28, 0  ;;  %v3019_v42 = vcombine.low %v3699_v20, %v3699_v20  ;;  %v3003_v20 = vcombine.low %v3554_v8, %v3702_v25 }
  0xde   : > { %1371 = vmatprep.mubr.bf16.mxu1 %v3382_v9 }
  0xdf   : > { %2973 = vmatmul.mubr.msk.bf16.vlgmr.msra.gmra.mxu0 %vm746_vm3, %v3762_v1  ;;  %v1818_v58 = vsel %vm450_vm0, %v3019_v42, 0 }
  0xe0   : > { %1354 = vmatpush1.bf16.msra.mxu1 %v3769_v31  ;;  %1393 = vmatpush1.bf16.msra.mxu0 %v3775_v39 }
  0xe1   : > { %1394 = vmatprep.subr.bf16.mxu0 %v3779_v11  ;;  %2978 = vmatprep.subr.msk.bf16.mxu1 %vm450_vm0, %v3783_v13 }
  0xe2   : > { %1412 = vmatprep.mubr.bf16.mxu0 %v3382_v9 }
  0xe3   : > { %2975 = vmatmul.mubr.msk.bf16.vlgmr.msra.gmra.mxu1 %vm746_vm3, %v3762_v1 }
  0xe4   : > { %1395 = vmatpush1.bf16.msra.mxu0 %v3794_v32  ;;  %1434 = vmatpush1.bf16.msra.mxu1 %v3800_v51 }
  0xe5   : > { %1435 = vmatprep.subr.bf16.mxu1 %v3804_v14  ;;  %2980 = vmatprep.subr.msk.bf16.mxu0 %vm450_vm0, %v3808_v15 }
  0xe6   : > { %1453 = vmatprep.mubr.bf16.mxu1 %v3382_v9 }
  0xe7   : > { %2977 = vmatmul.mubr.msk.bf16.vlgmr.msra.gmra.mxu0 %vm746_vm3, %v3762_v1 }
  0xe8   : > { %1436 = vmatpush1.bf16.msra.mxu1 %v3819_v40  ;;  %1475 = vmatpush1.bf16.msra.mxu0 %v1275_v61 }
  0xe9   : > { %1476 = vmatprep.subr.bf16.mxu0 %v2949_v16  ;;  %2982 = vmatprep.subr.msk.bf16.mxu1 %vm450_vm0, %v2967_v17 }
  0xea   : > { %1494 = vmatprep.mubr.bf16.mxu0 %v3382_v9 }
  0xeb   : > { %2979 = vmatmul.mubr.msk.bf16.vlgmr.msra.gmra.mxu1 %vm746_vm3, %v3762_v1 }
  0xec   : > { %1477 = vmatpush1.bf16.msra.mxu0 %v2948_v3  ;;  %1516 = vmatpush1.bf16.msra.mxu1 %v1281_v52 }
  0xed   : > { %1517 = vmatprep.subr.bf16.mxu1 %v2951_v19  ;;  %2984 = vmatprep.subr.msk.bf16.mxu0 %vm450_vm0, %v2969_v21 }
  0xee   : > { %1535 = vmatprep.mubr.bf16.mxu1 %v3382_v9 }
  0xef   : > { %2981 = vmatmul.mubr.msk.bf16.vlgmr.msra.gmra.mxu0 %vm746_vm3, %v3762_v1 }
  0xf0   : > { %1518 = vmatpush1.bf16.msra.mxu1 %v2950_v4  ;;  %1557 = vmatpush1.bf16.msra.mxu0 %v1287_v62 }
  0xf1   : > { %1558 = vmatprep.subr.bf16.mxu0 %v2953_v27  ;;  %2986 = vmatprep.subr.msk.bf16.mxu1 %vm450_vm0, %v2971_v41 }
  0xf2   : > { %1576 = vmatprep.mubr.bf16.mxu0 %v3382_v9 }
  0xf3   : > { %2983 = vmatmul.mubr.msk.bf16.vlgmr.msra.gmra.mxu1 %vm746_vm3, %v3762_v1 }
  0xf4   : > { %1559 = vmatpush1.bf16.msra.mxu0 %v2952_v5  ;;  %1598 = vmatpush1.bf16.msra.mxu1 %v1293_v22 }
  0xf5   : > { %1599 = vmatprep.subr.bf16.mxu1 %v2955_v29  ;;  %3021 = vmatprep.subr.msk.bf16.mxu0 %vm450_vm0, %v3734_v59 }
  0xf6   : > { %1617 = vmatprep.mubr.bf16.mxu1 %v3382_v9 }
  0xf7   : > { %2985 = vmatmul.mubr.msk.bf16.vlgmr.msra.gmra.mxu0 %vm746_vm3, %v3762_v1 }
  0xf8   : > { %1600 = vmatpush1.bf16.msra.mxu1 %v2954_v57  ;;  %1836 = vmatpush1.bf16.msra.mxu0 %v3746_v63 }
  0xf9   : > { %1837 = vmatprep.subr.bf16.mxu0 %v3750_v24  ;;  %3023 = vmatprep.subr.msk.bf16.mxu1 %vm450_vm0, %v3754_v10 }
  0xfa   : > { %1855 = vmatprep.mubr.bf16.mxu0 %v3382_v9 }
  0xfb   : > { %2987 = vmatmul.mubr.msk.bf16.vlgmr.msra.gmra.mxu1 %vm746_vm3, %v3762_v1 }
  0xfc   : > { %1838 = vmatpush1.bf16.msra.mxu0 %v3769_v31  ;;  %1877 = vmatpush1.bf16.msra.mxu1 %v3775_v39 }
  0xfd   : > { %1878 = vmatprep.subr.bf16.mxu1 %v3779_v11  ;;  %3025 = vmatprep.subr.msk.bf16.mxu0 %vm450_vm0, %v3783_v13 }
  0xfe   : > { %1896 = vmatprep.mubr.bf16.mxu1 %v3382_v9 }
  0xff   : > { %3022 = vmatmul.mubr.msk.bf16.vlgmr.msra.gmra.mxu0 %vm746_vm3, %v2988_v6 }
 0x100   : > { %1879 = vmatpush1.bf16.msra.mxu1 %v3794_v32  ;;  %1918 = vmatpush1.bf16.msra.mxu0 %v3800_v51 }
 0x101   : > { %1919 = vmatprep.subr.bf16.mxu0 %v3804_v14  ;;  %3027 = vmatprep.subr.msk.bf16.mxu1 %vm450_vm0, %v3808_v15 }
 0x102   : > { %1937 = vmatprep.mubr.bf16.mxu0 %v3382_v9 }
 0x103   : > { %3024 = vmatmul.mubr.msk.bf16.vlgmr.msra.gmra.mxu1 %vm746_vm3, %v2988_v6 }
 0x104   : > { %1920 = vmatpush1.bf16.msra.mxu0 %v3819_v40  ;;  %1959 = vmatpush1.bf16.msra.mxu1 %v1275_v61 }
 0x105   : > { %1960 = vmatprep.subr.bf16.mxu1 %v2949_v16  ;;  %3029 = vmatprep.subr.msk.bf16.mxu0 %vm450_vm0, %v2967_v17 }
 0x106   : > { %1978 = vmatprep.mubr.bf16.mxu1 %v3382_v9 }
 0x107   : > { %3026 = vmatmul.mubr.msk.bf16.vlgmr.msra.gmra.mxu0 %vm746_vm3, %v2988_v6 }
 0x108   : > { %1961 = vmatpush1.bf16.msra.mxu1 %v2948_v3  ;;  %2000 = vmatpush1.bf16.msra.mxu0 %v1281_v52 }
 0x109   : > { %2001 = vmatprep.subr.bf16.mxu0 %v2951_v19  ;;  %3031 = vmatprep.subr.msk.bf16.mxu1 %vm450_vm0, %v2969_v21 }
 0x10a   : > { %2019 = vmatprep.mubr.bf16.mxu0 %v3382_v9 }
 0x10b   : > { %3028 = vmatmul.mubr.msk.bf16.vlgmr.msra.gmra.mxu1 %vm746_vm3, %v2988_v6 }
 0x10c   : > { %2002 = vmatpush1.bf16.msra.mxu0 %v2950_v4  ;;  %2041 = vmatpush1.bf16.msra.mxu1 %v1287_v62 }
 0x10d   : > { %2042 = vmatprep.subr.bf16.mxu1 %v2953_v27  ;;  %3033 = vmatprep.subr.msk.bf16.mxu0 %vm450_vm0, %v2971_v41 }
 0x10e   : > { %2060 = vmatprep.mubr.bf16.mxu1 %v3382_v9 }
 0x10f   : > { %3030 = vmatmul.mubr.msk.bf16.vlgmr.msra.gmra.mxu0 %vm746_vm3, %v2988_v6 }
 0x110   : > { %2043 = vmatpush1.bf16.msra.mxu1 %v2952_v5  ;;  %2082 = vmatpush1.bf16.msra.mxu0 %v1293_v22  ;;  %v2193_v22 = vlaneseq }
 0x111   : > { %2083 = vmatprep.subr.bf16.mxu0 %v2955_v29  ;;  %3035 = vmatprep.subr.msk.bf16.mxu1 %vm450_vm0, %v3020_v7 }
 0x112   : > { %2101 = vmatprep.mubr.bf16.mxu0 %v3382_v9  ;;  %v3973_v42 = vshrl.u32 %v2193_v22, 7 }
 0x113   : > { %3032 = vmatmul.mubr.msk.bf16.vlgmr.msra.gmra.mxu1 %vm746_vm3, %v2988_v6 }
 0x114   : > { %2084 = vmatpush1.bf16.msra.mxu0 %v2954_v57  ;;  %2123 = vmatpush1.bf16.msra.mxu1 %v1818_v58 }
 0x115   : > { %2124 = vmatprep.subr.bf16.mxu1 %v3004_v30  ;;  %2142 = vmatprep.mubr.bf16.mxu1 %v3382_v9 }
 0x116   : > { %3081 = vmatprep.subr.mxu0 %v3383_v33 }
 0x117   : > { %3034 = vmatmul.mubr.msk.bf16.vlgmr.msra.gmra.mxu0 %vm746_vm3, %v2988_v6 }
 0x118   : > { %2125 = vmatpush1.bf16.msra.mxu1 %v3003_v20  ;;  %3083 = vmatprep.mubr.msk.f32.mxu0 %vm3384_vm4, %v3383_v33 }
 0x119   : > { %3086 = vmatprep.subr.mxu1 %v3383_v33 }
 0x11b   : > { %3036 = vmatmul.mubr.msk.bf16.vlgmr.msra.gmra.mxu1 %vm746_vm3, %v2988_v6 }
 0x11c   : > { %3088 = vmatprep.mubr.msk.f32.mxu1 %vm3384_vm4, %v3383_v33 }
 0x17b   : > { %v3925_v34 = vpop.f32.mrf.mxu0 }
 0x17d   : > { %v3927_v35 = vpop.f32.mrf.mxu0 }
 0x17f   : > { %v837_v36 = vpop.f32.mrf.mxu0 }
 0x181   : > { %v838_v37 = vpop.f32.mrf.mxu0 }
 0x182   : > { %v2195_v37 = vsub.s32 0, %v3973_v42 }
 0x183   : > { %v3929_v9 = vpop.f32.mrf.mxu1 }
 0x185   : > { %v3931_v38 = vpop.f32.mrf.mxu1 }
 0x187   : > { %v878_v8 = vpop.f32.mrf.mxu1  ;;  %v3933_v25 = vpop.f32.mrf.mxu0 }
 0x189   : > { %v879_v43 = vpop.f32.mrf.mxu1  ;;  %v3935_v44 = vpop.f32.mrf.mxu0 }
 0x18a   : > { %v3981_v43 = vpop.permute.xlu0 %2170 }
 0x18b   : > { %v919_v45 = vpop.f32.mrf.mxu0  ;;  %v3937_v46 = vpop.f32.mrf.mxu1 }
 0x18c   : > { %v3986_v45 = vld [vmem:[%s4318_s6] sm:$0xff] }
 0x18d   : > { %v920_v47 = vpop.f32.mrf.mxu0  ;;  %v3939_v48 = vpop.f32.mrf.mxu1 }
 0x18e   : > { %v2199_v47 = vsub.s32 1, %v3973_v42 }
 0x18f   : > { %v960_v49 = vpop.f32.mrf.mxu1  ;;  %v3941_v50 = vpop.f32.mrf.mxu0 }
 0x191   : > { %v961_v53 = vpop.f32.mrf.mxu1  ;;  %v3943_v54 = vpop.f32.mrf.mxu0 }
 0x193   : > { %v1001_v55 = vpop.f32.mrf.mxu0  ;;  %v3945_v56 = vpop.f32.mrf.mxu1 }
 0x195   : > { %v1002_v59 = vpop.f32.mrf.mxu0  ;;  %v3947_v23 = vpop.f32.mrf.mxu1 }
 0x197   : > { %v1042_v60 = vpop.f32.mrf.mxu1  ;;  %v3949_v63 = vpop.f32.mrf.mxu0 }
 0x198   : > { %v2203_v60 = vsub.s32 2, %v3973_v42 }
 0x199   : > { %v1043_v24 = vpop.f32.mrf.mxu1  ;;  %v3951_v10 = vpop.f32.mrf.mxu0 }
 0x19b   : > { %v1083_v12 = vpop.f32.mrf.mxu0  ;;  %v3953_v1 = vpop.f32.mrf.mxu1 }
 0x19d   : > { %v1084_v31 = vpop.f32.mrf.mxu0  ;;  %v3955_v39 = vpop.f32.mrf.mxu1 }
 0x19e   : > { %v2196_v31 = vrot.slane %v3986_v45, %v2195_v37 }
 0x19f   : > { %v1124_v11 = vpop.f32.mrf.mxu1  ;;  %v1332_v13 = vpop.f32.mrf.mxu0 }
 0x1a0   : > { %v1333_v8 = vadd.f32 %v1332_v13, %v3925_v34  ;;  %v2207_v34 = vsub.s32 3, %v3973_v42 }
 0x1a1   : > { %v1125_v2 = vpop.f32.mrf.mxu1  ;;  %v1334_v32 = vpop.f32.mrf.mxu0 }
 0x1a2   : > { %v1335_v55 = vadd.f32 %v1334_v32, %v3927_v35  ;;  %v2200_v2 = vrot.slane %v3986_v45, %v2199_v47 }
 0x1a3   : > { %v1336_v51 = vpop.f32.mrf.mxu0  ;;  %v1373_v14 = vpop.f32.mrf.mxu1 }
 0x1a4   : > { %v1374_v11 = vadd.f32 %v1373_v14, %v3929_v9  ;;  %v2204_v9 = vrot.slane %v3986_v45, %v2203_v60 }
 0x1a5   : > { %v1337_v15 = vpop.f32.mrf.mxu0  ;;  %v1375_v0 = vpop.f32.mrf.mxu1 }
 0x1a6   : > { %v2211_v15 = vsub.s32 4, %v3973_v42 }
 0x1a7   : > { %v1377_v40 = vpop.f32.mrf.mxu1  ;;  %v1414_v61 = vpop.f32.mrf.mxu0 }
 0x1a8   : > { %v2215_v40 = vsub.s32 5, %v3973_v42 }
 0x1a9   : > { %v1378_v16 = vpop.f32.mrf.mxu1  ;;  %v1416_v17 = vpop.f32.mrf.mxu0 }
 0x1aa   : > { %v1376_v16 = vadd.f32 %v1375_v0, %v3931_v38 }
 0x1ab   : > { %v1418_v18 = vpop.f32.mrf.mxu0  ;;  %v3957_v3 = vpop.f32.mrf.mxu1 }
 0x1ad   : > { %v1419_v52 = vpop.f32.mrf.mxu0  ;;  %v3959_v19 = vpop.f32.mrf.mxu1 }
 0x1af   : > { %v1459_v21 = vpop.f32.mrf.mxu1  ;;  %v3961_v26 = vpop.f32.mrf.mxu0 }
 0x1b1   : > { %v1460_v4 = vpop.f32.mrf.mxu1  ;;  %v3963_v62 = vpop.f32.mrf.mxu0 }
 0x1b2   : > { %v2208_v4 = vrot.slane %v3986_v45, %v2207_v34 }
 0x1b3   : > { %v1500_v27 = vpop.f32.mrf.mxu0  ;;  %v3965_v41 = vpop.f32.mrf.mxu1 }
 0x1b5   : > { %v1501_v28 = vpop.f32.mrf.mxu0  ;;  %v3967_v5 = vpop.f32.mrf.mxu1 }
 0x1b6   : > { %v1415_v28 = vadd.f32 %v1414_v61, %v3933_v25 }
 0x1b7   : > { %v1541_v29 = vpop.f32.mrf.mxu1  ;;  %v3969_v57 = vpop.f32.mrf.mxu0 }
 0x1b8   : > { %v1417_v29 = vadd.f32 %v1416_v17, %v3935_v44  ;;  %v1456_v17 = vadd.f32 %v3957_v3, %v3937_v46  ;;  %v1458_v46 = vadd.f32 %v3959_v19, %v3939_v48  ;;  %v4055_v48 = vld [vmem:[%s4318_s6 + $0x8] sm:$0xff]  ;;  %v1497_v19 = vadd.f32 %v3961_v26, %v3941_v50 }
 0x1b9   : > { %v1542_v6 = vpop.f32.mrf.mxu1  ;;  %v3971_v7 = vpop.f32.mrf.mxu0  ;;  %v1499_v50 = vadd.f32 %v3963_v62, %v3943_v54  ;;  %v1538_v54 = vadd.f32 %v3965_v41, %v3945_v56  ;;  %v1540_v56 = vadd.f32 %v3967_v5, %v3947_v23  ;;  %v1579_v23 = vadd.f32 %v3969_v57, %v3949_v63 }
 0x1ba   : > { %v1581_v63 = vadd.f32 %v3971_v7, %v3951_v10 }
 0x1bb   : > { %v1582_v58 = vpop.f32.mrf.mxu0  ;;  %v3975_v30 = vpop.f32.mrf.mxu1 }
 0x1bc   : > { %v1620_v10 = vadd.f32 %v3975_v30, %v3953_v1 }
 0x1bd   : > { %v1583_v20 = vpop.f32.mrf.mxu0  ;;  %v3977_v36 = vpop.f32.mrf.mxu1 }
 0x1be   : > { %v2212_v20 = vrot.slane %v3986_v45, %v2211_v15  ;;  %v1622_v1 = vadd.f32 %v3977_v36, %v3955_v39 }
 0x1bf   : > { %v1623_v49 = vpop.f32.mrf.mxu1  ;;  %v1857_v53 = vpop.f32.mrf.mxu0 }
 0x1c0   : > { %v2151_v59 = vadd.f32 %v1857_v53, %v1333_v8  ;;  %v2216_v8 = vrot.slane %v3986_v45, %v2215_v40  ;;  %v2219_v49 = vsub.s32 6, %v3973_v42 }
 0x1c1   : > { %v1624_v24 = vpop.f32.mrf.mxu1  ;;  %v1859_v12 = vpop.f32.mrf.mxu0 }
 0x1c2   : > { %v2152_v13 = vadd.f32 %v1859_v12, %v1335_v55  ;;  %v2173_v35 = vadd.f32 %v3981_v43, %v2151_v59  ;;  %v2223_v24 = vsub.s32 7, %v3973_v42 }
 0x1c3   : > { %v1861_v32 = vpop.f32.mrf.mxu0  ;;  %v1898_v51 = vpop.f32.mrf.mxu1 }
 0x1c4   : > { %v2174_v18 = vadd.f32 %v3981_v43, %v2152_v13  ;;  %v2153_v52 = vadd.f32 %v1898_v51, %v1374_v11  ;;  %v4010_v27 = vmul.f32 %v2196_v31, %v2173_v35  ;;  %v2220_v51 = vrot.slane %v3986_v45, %v2219_v49 }
 0x1c5   : > { %v1862_v14 = vpop.f32.mrf.mxu0  ;;  %v1900_v21 = vpop.f32.mrf.mxu1 }
 0x1c6   : > { %v4013_v22 = vmul.f32 %v2200_v2, %v2174_v18  ;;  %v2175_v38 = vadd.f32 %v3981_v43, %v2153_v52  ;;  %v2154_v0 = vadd.f32 %v1900_v21, %v1376_v16  ;;  %v2306_v31 = vmul.f32 %v4010_v27, %v4010_v27 }
 0x1c7   : > { %v1902_v6 = vpop.f32.mrf.mxu1  ;;  %v1939_v58 = vpop.f32.mrf.mxu0 }
 0x1c8   : > { %v2307_v25 = vmul.f32 %v4013_v22, %v4013_v22  ;;  %v4026_v61 = vmul.f32 %v2204_v9, %v2175_v38  ;;  %v2176_v53 = vadd.f32 %v3981_v43, %v2154_v0  ;;  %v2155_v44 = vadd.f32 %v1939_v58, %v1415_v28 }
 0x1c9   : > { %v1903_v55 = vpop.f32.mrf.mxu1  ;;  %v1941_v59 = vpop.f32.mrf.mxu0  ;;  %v2289_v12 = vadd.f32 %v4013_v22, %v4010_v27  ;;  %v2224_v38 = vrot.slane %v3986_v45, %v2223_v24  ;;  %v2228_v45 = vrot.slane %v4055_v48, %v2195_v37  ;;  %v2232_v37 = vrot.slane %v4055_v48, %v2199_v47 }
 0x1ca   : > { %v2308_v11 = vmul.f32 %v4026_v61, %v4026_v61  ;;  %v4038_v13 = vmul.f32 %v2208_v4, %v2176_v53  ;;  %v2177_v2 = vadd.f32 %v3981_v43, %v2155_v44  ;;  %v2156_v35 = vadd.f32 %v1941_v59, %v1417_v29 }
 0x1cb   : > { %v1943_v3 = vpop.f32.mrf.mxu0  ;;  %v1980_v32 = vpop.f32.mrf.mxu1  ;;  %v2290_v16 = vadd.f32 %v2289_v12, %v4026_v61  ;;  %v2322_v18 = vadd.f32 %v2307_v25, %v2306_v31  ;;  %v2236_v47 = vrot.slane %v4055_v48, %v2203_v60  ;;  %v2240_v60 = vrot.slane %v4055_v48, %v2207_v34 }
 0x1cc   : > { %v2309_v52 = vmul.f32 %v4038_v13, %v4038_v13  ;;  %v4049_v9 = vmul.f32 %v2212_v20, %v2177_v2  ;;  %v2178_v14 = vadd.f32 %v3981_v43, %v2156_v35  ;;  %v2157_v21 = vadd.f32 %v1980_v32, %v1456_v17 }
 0x1cd   : > { %v1944_v4 = vpop.f32.mrf.mxu0  ;;  %v1982_v28 = vpop.f32.mrf.mxu1  ;;  %v2291_v0 = vadd.f32 %v2290_v16, %v4038_v13  ;;  %v2323_v29 = vadd.f32 %v2322_v18, %v2308_v11  ;;  %v2244_v34 = vrot.slane %v4055_v48, %v2211_v15  ;;  %v2248_v15 = vrot.slane %v4055_v48, %v2215_v40 }
 0x1ce   : > { %v2310_v6 = vmul.f32 %v4049_v9, %v4049_v9  ;;  %v4065_v58 = vmul.f32 %v2216_v8, %v2178_v14  ;;  %v2179_v20 = vadd.f32 %v3981_v43, %v2157_v21  ;;  %v2158_v25 = vadd.f32 %v1982_v28, %v1458_v46 }
 0x1cf   : > { %v1984_v26 = vpop.f32.mrf.mxu1  ;;  %v2021_v53 = vpop.f32.mrf.mxu0  ;;  %v2292_v44 = vadd.f32 %v2291_v0, %v4049_v9  ;;  %v2324_v17 = vadd.f32 %v2323_v29, %v2309_v52  ;;  %v2252_v40 = vrot.slane %v4055_v48, %v2219_v49 }
 0x1d0   : > { %v2311_v55 = vmul.f32 %v4065_v58, %v4065_v58  ;;  %v4076_v8 = vmul.f32 %v2220_v51, %v2179_v20  ;;  %v2180_v59 = vadd.f32 %v3981_v43, %v2158_v25  ;;  %v2159_v12 = vadd.f32 %v2021_v53, %v1497_v19 }
 0x1d1   : > { %v2293_v62 = vadd.f32 %v2292_v44, %v4065_v58  ;;  %v2325_v31 = vadd.f32 %v2324_v17, %v2310_v6  ;;  %v1985_v11 = vpop.f32.mrf.mxu1  ;;  %v2023_v2 = vpop.f32.mrf.mxu0 }
 0x1d2   : > { %v2312_v35 = vmul.f32 %v4076_v8, %v4076_v8  ;;  %v4087_v46 = vmul.f32 %v2224_v38, %v2180_v59  ;;  %v2181_v3 = vadd.f32 %v3981_v43, %v2159_v12  ;;  %v2160_v32 = vadd.f32 %v2023_v2, %v1499_v50 }
 0x1d3   : > { %v2294_v41 = vadd.f32 %v2293_v62, %v4076_v8  ;;  %v2326_v51 = vadd.f32 %v2325_v31, %v2311_v55  ;;  %v2025_v16 = vpop.f32.mrf.mxu0  ;;  %v2062_v18 = vpop.f32.mrf.mxu1 }
 0x1d4   : > { %v2313_v52 = vmul.f32 %v4087_v46, %v4087_v46  ;;  %v4098_v14 = vmul.f32 %v2228_v45, %v2181_v3  ;;  %v2182_v21 = vadd.f32 %v3981_v43, %v2160_v32  ;;  %v2161_v19 = vadd.f32 %v2062_v18, %v1538_v54 }
 0x1d5   : > { %v2295_v5 = vadd.f32 %v2294_v41, %v4087_v46  ;;  %v2327_v4 = vadd.f32 %v2326_v51, %v2312_v35  ;;  %v2026_v28 = vpop.f32.mrf.mxu0  ;;  %v2064_v38 = vpop.f32.mrf.mxu1  ;;  %v2256_v18 = vrot.slane %v4055_v48, %v2223_v24 }
 0x1d6   : > { %v2314_v0 = vmul.f32 %v4098_v14, %v4098_v14  ;;  %v4109_v29 = vmul.f32 %v2232_v37, %v2182_v21  ;;  %v2183_v6 = vadd.f32 %v3981_v43, %v2161_v19  ;;  %v2162_v20 = vadd.f32 %v2064_v38, %v1540_v56 }
 0x1d7   : > { %v2296_v57 = vadd.f32 %v2295_v5, %v4098_v14  ;;  %v2328_v25 = vadd.f32 %v2327_v4, %v2313_v52  ;;  %v2066_v50 = vpop.f32.mrf.mxu1  ;;  %v2103_v26 = vpop.f32.mrf.mxu0 }
 0x1d8   : > { %v2315_v53 = vmul.f32 %v4109_v29, %v4109_v29  ;;  %v4120_v45 = vmul.f32 %v2236_v47, %v2183_v6  ;;  %v2184_v44 = vadd.f32 %v3981_v43, %v2162_v20  ;;  %v2163_v17 = vadd.f32 %v2103_v26, %v1579_v23  ;;  %v2339_v50 = vld [vmem:[%s4317_s5] sm:$0xff] }
 0x1d9   : > { %v2329_v7 = vadd.f32 %v2328_v25, %v2314_v0  ;;  %v2297_v55 = vadd.f32 %v2296_v57, %v4109_v29  ;;  %v2067_v59 = vpop.f32.mrf.mxu1  ;;  %v2105_v12 = vpop.f32.mrf.mxu0 }
 0x1da   : > { %v2316_v54 = vmul.f32 %v4120_v45, %v4120_v45  ;;  %v4131_v62 = vmul.f32 %v2240_v60, %v2184_v44  ;;  %v2185_v31 = vadd.f32 %v3981_v43, %v2163_v17  ;;  %v2164_v11 = vadd.f32 %v2105_v12, %v1581_v63 }
 0x1db   : > { %v2330_v30 = vadd.f32 %v2329_v7, %v2315_v53  ;;  %v2298_v2 = vadd.f32 %v2297_v55, %v4120_v45  ;;  %v2107_v37 = vpop.f32.mrf.mxu0  ;;  %v2144_v35 = vpop.f32.mrf.mxu1 }
 0x1dc   : > { %v2317_v3 = vmul.f32 %v4131_v62, %v4131_v62  ;;  %v4142_v32 = vmul.f32 %v2244_v34, %v2185_v31  ;;  %v2186_v56 = vadd.f32 %v3981_v43, %v2164_v11  ;;  %v2165_v41 = vadd.f32 %v2144_v35, %v1620_v10 }
 0x1dd   : > { %v2331_v51 = vadd.f32 %v2330_v30, %v2316_v54  ;;  %v2299_v39 = vadd.f32 %v2298_v2, %v4131_v62  ;;  %v2108_v36 = vpop.f32.mrf.mxu0  ;;  %v2146_v16 = vpop.f32.mrf.mxu1  ;;  %v2491_v54 = vld [vmem:[%s4315_s3] sm:$0xff] }
 0x1de   : > { %v2318_v49 = vmul.f32 %v4142_v32, %v4142_v32  ;;  %v4151_v47 = vmul.f32 %v2248_v15, %v2186_v56  ;;  %v2187_v52 = vadd.f32 %v3981_v43, %v2165_v41  ;;  %v2166_v21 = vadd.f32 %v2146_v16, %v1622_v1  ;;  %v2493_v1 = vld [vmem:[%s4316_s4] sm:$0xff] }
 0x1df   : > { %v2148_v19 = vpop.f32.mrf.mxu1  ;;  %v2300_v23 = vadd.f32 %v2299_v39, %v4142_v32  ;;  %v2332_v5 = vadd.f32 %v2331_v51, %v2317_v3 }
 0x1e0   : > { %v4155_v4 = vmul.f32 %v2252_v40, %v2187_v52  ;;  %v2188_v28 = vadd.f32 %v3981_v43, %v2166_v21  ;;  %v2319_v42 = vmul.f32 %v4151_v47, %v4151_v47 }
 0x1e1   : > { %v2149_v24 = vpop.f32.mrf.mxu1  ;;  %v2301_v48 = vadd.f32 %v2300_v23, %v4151_v47  ;;  %v2333_v38 = vadd.f32 %v2332_v5, %v2318_v49 }
 0x1e2   : > { %v4161_v60 = vmul.f32 %v2256_v18, %v2188_v28  ;;  %v2320_v0 = vmul.f32 %v4155_v4, %v4155_v4 }
 0x1e3   : > { %v2302_v6 = vadd.f32 %v2301_v48, %v4155_v4  ;;  %v2334_v20 = vadd.f32 %v2333_v38, %v2319_v42 }
 0x1e4   : > { %v2321_v63 = vmul.f32 %v4161_v60, %v4161_v60 }
 0x1e5   : > { %v2303_v43 = vadd.f32 %v2302_v6, %v4161_v60  ;;  %v2335_v57 = vadd.f32 %v2334_v20, %v2320_v0 }
 0x1e7   : > { %2304 = vadd.xlane.f32.xlu1 %v2303_v43  ;;  %v2336_v25 = vadd.f32 %v2335_v57, %v2321_v63 }
 0x1e9   : > { %2337 = vadd.xlane.f32.xlu0 %v2336_v25 }
 0x270   : > { %v2305_v26 = vpop.xlane.xlu1 %2304 }
 0x271   : > { %3082 = vmatpush3.msra.mxu0 %v2305_v26 }
 0x272   : > { %v2338_v34 = vpop.xlane.xlu0 %2337  ;;  %3084 = vmatmul.mubr.msk.f32.vlgmr.msra.gmra.mxu0 %vm2340_vm5, %v2339_v50 }
 0x273   : > { %3087 = vmatpush3.msra.mxu1 %v2338_v34 }
 0x274   : > { %3089 = vmatmul.mubr.msk.f32.vlgmr.msra.gmra.mxu1 %vm2340_vm5, %v2339_v50 }
 0x332   : > { %v2410_v53 = vpop.f32.mrf.mxu0 }
 0x333   : > { %v2484_v44 = vmul.f32 0.001953125, %v2410_v53 }
 0x334   : > { %v2480_v17 = vpop.f32.mrf.mxu1  ;;  %v3085_v10 = vpop.f32.mrf.mxu0 }
 0x335   : > { %v2486_v7 = vmul.f32 %v2484_v44, %v2484_v44  ;;  %v2485_v55 = vmul.f32 0.001953125, %v2480_v17 }
 0x336   : > { %v3090_v59 = vpop.f32.mrf.mxu1 }
 0x337   : > { %v2487_v12 = vsub.f32 %v2485_v55, %v2486_v7 }
 0x339   : > { %v2488_v33 = vmax.f32 %v2487_v12, 0.0 }
 0x33b   : > { %v2489_v15 = vadd.f32 1e-05, %v2488_v33 }
 0x33d   : > { %3203 = vrsqrt.f32 %v2489_v15 }
 0x34a   : > { %v3204_v31 = vpop.eup %3203 }
 0x34b   : > { %v2492_v11 = vmul.f32 %v3204_v31, %v2491_v54 }
 0x34d   : > { %2498 = vperm.xlu1 %3162, %v2492_v11   ;;  %v2494_v30 = vmul.f32 %v2492_v11, %v2484_v44 }
 0x34f   : > { %v2495_v2 = vsub.f32 %v2493_v1, %v2494_v30 }
 0x351   : > { %2519 = vperm.xlu0 %3161, %v2495_v2  }
 0x3c8   : > { %v2499_v37 = vpop.permute.xlu1 %2498 }
 0x3c9   : > { %v2501_v35 = vmul.f32 %v2499_v37, %v4010_v27  ;;  %v2502_v40 = vmul.f32 %v2499_v37, %v4013_v22  ;;  %v2503_v3 = vmul.f32 %v2499_v37, %v4026_v61  ;;  %v2504_v41 = vmul.f32 %v2499_v37, %v4038_v13 }
 0x3ca   : > { %v2505_v51 = vmul.f32 %v2499_v37, %v4049_v9  ;;  %v2506_v18 = vmul.f32 %v2499_v37, %v4065_v58  ;;  %v2507_v27 = vmul.f32 %v2499_v37, %v4076_v8  ;;  %v2508_v61 = vmul.f32 %v2499_v37, %v4087_v46 }
 0x3cb   : > { %v2509_v13 = vmul.f32 %v2499_v37, %v4098_v14  ;;  %v2510_v23 = vmul.f32 %v2499_v37, %v4109_v29  ;;  %v2511_v46 = vmul.f32 %v2499_v37, %v4120_v45  ;;  %v2512_v42 = vmul.f32 %v2499_v37, %v4131_v62 }
 0x3cc   : > { %v2520_v56 = vpop.permute.xlu0 %2519  ;;  %v2513_v29 = vmul.f32 %v2499_v37, %v4142_v32  ;;  %v2514_v45 = vmul.f32 %v2499_v37, %v4151_v47  ;;  %v2515_v62 = vmul.f32 %v2499_v37, %v4155_v4  ;;  %v2516_v32 = vmul.f32 %v2499_v37, %v4161_v60 }
 0x3cd   : > { %v4185_v39 = vadd.f32 %v2520_v56, %v2501_v35  ;;  %v4187_v36 = vadd.f32 %v2520_v56, %v2502_v40  ;;  %v4189_v16 = vadd.f32 %v2520_v56, %v2503_v3  ;;  %v4192_v49 = vadd.f32 %v2520_v56, %v2504_v41 }
 0x3ce   : > { %v4195_v22 = vadd.f32 %v2520_v56, %v2505_v51  ;;  %v4199_v52 = vadd.f32 %v2520_v56, %v2506_v18  ;;  %v4201_v9 = vadd.f32 %v2520_v56, %v2507_v27  ;;  %v4207_v5 = vadd.f32 %v2520_v56, %v2508_v61 }
 0x3cf   : > { %v3039_v21 = vmul.f32 -1.442695, %v4185_v39  ;;  %v3040_v19 = vmul.f32 -1.442695, %v4187_v36  ;;  %v3041_v58 = vmul.f32 -1.442695, %v4189_v16  ;;  %v4211_v28 = vadd.f32 %v2520_v56, %v2509_v13 }
 0x3d0   : > { %v3042_v8 = vmul.f32 -1.442695, %v4192_v49  ;;  %v3043_v14 = vmul.f32 -1.442695, %v4195_v22  ;;  %v4215_v24 = vadd.f32 %v2520_v56, %v2510_v23  ;;  %v3044_v48 = vmul.f32 -1.442695, %v4199_v52 }
 0x3d1   : > { %3205 = vpow2.f32 %v3039_v21  ;;  %v4219_v38 = vadd.f32 %v2520_v56, %v2511_v46  ;;  %v3045_v0 = vmul.f32 -1.442695, %v4201_v9  ;;  %v4223_v6 = vadd.f32 %v2520_v56, %v2512_v42 }
 0x3d2   : > { %3207 = vpow2.f32 %v3040_v19  ;;  %v3046_v20 = vmul.f32 -1.442695, %v4207_v5  ;;  %v4227_v63 = vadd.f32 %v2520_v56, %v2513_v29  ;;  %v3047_v43 = vmul.f32 -1.442695, %v4211_v28 }
 0x3d3   : > { %3209 = vpow2.f32 %v3041_v58  ;;  %v4231_v57 = vadd.f32 %v2520_v56, %v2514_v45  ;;  %v3048_v25 = vmul.f32 -1.442695, %v4215_v24  ;;  %v4234_v47 = vadd.f32 %v2520_v56, %v2515_v62 }
 0x3d4   : > { %3211 = vpow2.f32 %v3042_v8  ;;  %v3049_v50 = vmul.f32 -1.442695, %v4219_v38  ;;  %v4237_v26 = vadd.f32 %v2520_v56, %v2516_v32  ;;  %v3050_v4 = vmul.f32 -1.442695, %v4223_v6 }
 0x3d5   : > { %3213 = vpow2.f32 %v3043_v14  ;;  %v3051_v34 = vmul.f32 -1.442695, %v4227_v63  ;;  %v3052_v60 = vmul.f32 -1.442695, %v4231_v57  ;;  %v3053_v53 = vmul.f32 -1.442695, %v4234_v47 }
 0x3d6   : > { %3215 = vpow2.f32 %v3044_v48  ;;  %v3054_v44 = vmul.f32 -1.442695, %v4237_v26 }
 0x3d7   : > { %3217 = vpow2.f32 %v3045_v0 }
 0x3d8   : > { %3219 = vpow2.f32 %v3046_v20 }
 0x3d9   : > { %3221 = vpow2.f32 %v3047_v43 }
 0x3da   : > { %3223 = vpow2.f32 %v3048_v25 }
 0x3db   : > { %3225 = vpow2.f32 %v3049_v50 }
 0x3dc   : > { %3227 = vpow2.f32 %v3050_v4 }
 0x3dd   : > { %3229 = vpow2.f32 %v3051_v34 }
 0x3de   : > { %v3206_v17 = vpop.eup %3205  ;;  %3231 = vpow2.f32 %v3052_v60 }
 0x3df   : > { %v3208_v10 = vpop.eup %3207  ;;  %3233 = vpow2.f32 %v3053_v53  ;;  %v2586_v7 = vadd.f32 1.0, %v3206_v17 }
 0x3e0   : > { %v3210_v55 = vpop.eup %3209  ;;  %3235 = vpow2.f32 %v3054_v44  ;;  %v2587_v59 = vadd.f32 1.0, %v3208_v10 }
 0x3e1   : > { %v3212_v12 = vpop.eup %3211  ;;  %v2588_v33 = vadd.f32 1.0, %v3210_v55  ;;  %3237 = vrcp.f32 %v2586_v7 }
 0x3e2   : > { %v3214_v15 = vpop.eup %3213  ;;  %v2589_v54 = vadd.f32 1.0, %v3212_v12  ;;  %3239 = vrcp.f32 %v2587_v59 }
 0x3e3   : > { %v3216_v31 = vpop.eup %3215  ;;  %v2590_v11 = vadd.f32 1.0, %v3214_v15  ;;  %3241 = vrcp.f32 %v2588_v33 }
 0x3e4   : > { %v3218_v1 = vpop.eup %3217  ;;  %v2591_v30 = vadd.f32 1.0, %v3216_v31  ;;  %3243 = vrcp.f32 %v2589_v54 }
 0x3e5   : > { %v3220_v2 = vpop.eup %3219  ;;  %v2592_v37 = vadd.f32 1.0, %v3218_v1  ;;  %3245 = vrcp.f32 %v2590_v11 }
 0x3e6   : > { %v3222_v35 = vpop.eup %3221  ;;  %v2593_v40 = vadd.f32 1.0, %v3220_v2  ;;  %3247 = vrcp.f32 %v2591_v30 }
 0x3e7   : > { %v3224_v3 = vpop.eup %3223  ;;  %v2594_v56 = vadd.f32 1.0, %v3222_v35  ;;  %3249 = vrcp.f32 %v2592_v37 }
 0x3e8   : > { %v3226_v41 = vpop.eup %3225  ;;  %v2595_v51 = vadd.f32 1.0, %v3224_v3  ;;  %3251 = vrcp.f32 %v2593_v40 }
 0x3e9   : > { %v3228_v18 = vpop.eup %3227  ;;  %v2596_v27 = vadd.f32 1.0, %v3226_v41  ;;  %3253 = vrcp.f32 %v2594_v56 }
 0x3ea   : > { %v3230_v61 = vpop.eup %3229  ;;  %v2597_v13 = vadd.f32 1.0, %v3228_v18  ;;  %3255 = vrcp.f32 %v2595_v51 }
 0x3eb   : > { %v3232_v21 = vpop.eup %3231  ;;  %v2598_v19 = vadd.f32 1.0, %v3230_v61  ;;  %3257 = vrcp.f32 %v2596_v27 }
 0x3ec   : > { %v3234_v58 = vpop.eup %3233  ;;  %v2599_v23 = vadd.f32 1.0, %v3232_v21  ;;  %3259 = vrcp.f32 %v2597_v13 }
 0x3ed   : > { %v3236_v8 = vpop.eup %3235  ;;  %v2600_v46 = vadd.f32 1.0, %v3234_v58  ;;  %3261 = vrcp.f32 %v2598_v19 }
 0x3ee   : > { %v3238_v14 = vpop.eup %3237  ;;  %v2601_v42 = vadd.f32 1.0, %v3236_v8  ;;  %3263 = vrcp.f32 %v2599_v23 }
 0x3ef   : > { %v3240_v48 = vpop.eup %3239  ;;  %3265 = vrcp.f32 %v2600_v46  ;;  %v2634_v29 = vmul.f32 %v3238_v14, %v4185_v39 }
 0x3f0   : > { %v3242_v0 = vpop.eup %3241  ;;  %3267 = vrcp.f32 %v2601_v42  ;;  %v2635_v45 = vmul.f32 %v3240_v48, %v4187_v36 }
 0x3f1   : > { %v3244_v20 = vpop.eup %3243  ;;  %v2636_v62 = vmul.f32 %v3242_v0, %v4189_v16 }
 0x3f2   : > { %v3246_v43 = vpop.eup %3245  ;;  %v2637_v32 = vmul.f32 %v3244_v20, %v4192_v49  ;;  %v3068_v25 = vpack.c.bf16 %v2635_v45, %v2634_v29 }
 0x3f3   : > { %v3248_v50 = vpop.eup %3247  ;;  %v2638_v4 = vmul.f32 %v3246_v43, %v4195_v22 }
 0x3f4   : > { %v3250_v34 = vpop.eup %3249  ;;  %v2639_v60 = vmul.f32 %v3248_v50, %v4199_v52  ;;  %v3069_v53 = vpack.c.bf16 %v2637_v32, %v2636_v62  ;;  %2714 = vst [vmem:[%s4251_s8] sm:$0xff] %v3068_v25 }
 0x3f5   : > { %v3252_v39 = vpop.eup %3251  ;;  %v2640_v36 = vmul.f32 %v3250_v34, %v4201_v9 }
 0x3f6   : > { %v3254_v16 = vpop.eup %3253  ;;  %v2641_v49 = vmul.f32 %v3252_v39, %v4207_v5  ;;  %v3070_v44 = vpack.c.bf16 %v2639_v60, %v2638_v4  ;;  %2715 = vst [vmem:[%s4251_s8 + $0x8] sm:$0xff] %v3069_v53 }
 0x3f7   : > { %v3256_v22 = vpop.eup %3255  ;;  %v2642_v17 = vmul.f32 %v3254_v16, %v4211_v28 }
 0x3f8   : > { %v3258_v52 = vpop.eup %3257  ;;  %v2643_v10 = vmul.f32 %v3256_v22, %v4215_v24  ;;  %v3071_v7 = vpack.c.bf16 %v2641_v49, %v2640_v36  ;;  %2716 = vst [vmem:[%s4251_s8 + $0x10] sm:$0xff] %v3070_v44 }
 0x3f9   : > { %v3260_v55 = vpop.eup %3259  ;;  %v2644_v9 = vmul.f32 %v3258_v52, %v4219_v38 }
 0x3fa   : > { %v3262_v59 = vpop.eup %3261  ;;  %v2645_v5 = vmul.f32 %v3260_v55, %v4223_v6  ;;  %v3072_v12 = vpack.c.bf16 %v2643_v10, %v2642_v17  ;;  %2717 = vst [vmem:[%s4251_s8 + $0x18] sm:$0xff] %v3071_v7 }
 0x3fb   : > { %v3264_v33 = vpop.eup %3263  ;;  %v2646_v28 = vmul.f32 %v3262_v59, %v4227_v63 }
 0x3fc   : > { %v3266_v15 = vpop.eup %3265  ;;  %v2647_v24 = vmul.f32 %v3264_v33, %v4231_v57  ;;  %v3073_v54 = vpack.c.bf16 %v2645_v5, %v2644_v9  ;;  %2718 = vst [vmem:[%s4251_s8 + $0x20] sm:$0xff] %v3072_v12 }
 0x3fd   : > { %v3268_v31 = vpop.eup %3267  ;;  %v2648_v38 = vmul.f32 %v3266_v15, %v4234_v47 }
 0x3fe   : > { %v2649_v6 = vmul.f32 %v3268_v31, %v4237_v26  ;;  %v3074_v11 = vpack.c.bf16 %v2647_v24, %v2646_v28  ;;  %2719 = vst [vmem:[%s4251_s8 + $0x28] sm:$0xff] %v3073_v54 }
 0x400   : > { %v3075_v1 = vpack.c.bf16 %v2649_v6, %v2648_v38  ;;  %2720 = vst [vmem:[%s4251_s8 + $0x30] sm:$0xff] %v3074_v11 }
 0x402   : > { %2721 = vst [vmem:[%s4251_s8 + $0x38] sm:$0xff] %v3075_v1 }
 0x403   : > { %3310 = shalt.err (!%p3307_p3)
}
 0x404   : > { %s3311_s21 = scalar_lea.hbm %s2737_s28, 1024  ;;  %s3315_s23 = scalar_lea.hbm %s4319_s7, 2048 }
 0x405   : > { %p3312_p5 = scmp.ne.s32.totalorder %s2737_s28, %s3311_s21  ;;  %p3316_p7 = scmp.lt.s32.totalorder %s2737_s28, %s4319_s7 }
 0x406   : > { %p3317_p10 = scmp.lt.s32.totalorder %s3315_s23, %s3311_s21 }
 0x407   : > { %p3313_p6 = pnand %p3312_p5, %p3477_p9 }
 0x408   : > { %p3318_p13 = por %p3317_p10, %p3316_p7 }
 0x409   : > { %p3314_p4 = pneg %p3313_p6 }
 0x40b   : > { %p3319_p8 = pnand %p3318_p13, %p3314_p4 }
 0x40d   : > { %3322 = shalt.err (!%p3319_p8)
}
 0x40e   : > { %3096 = dma.vmem_to_hbm [thread:$0]  (%p3477_p9), %s2740_s12, 1024, %s2737_s28, %s2723_s18  }
 0x40f PF: > { %s2751_s10 = sand.u32 1, %s3357_s24   ;;  %p4329_p11 = scmp.ne.s32.totalorder %s4327_s16, 0 }
 0x410   : > { %p4330_p12 = scmp.ge.s32.totalorder %s3377_s29, 2  ;;  %s2752_s11 = scalar_lea.sflag [#allocation5], %s2751_s10 }
 0x412   : > { %p3103_p0 = pnand %p4330_p12, %p4329_p11 }
 0x414   : > { %p3104_p1 = pneg %p3103_p0 }
 0x416   : > { %3352 = dma.done.wait (%p3104_p1), %s2752_s11, 1024  }
 0x417   : > { %3354 = vsyncadd (%p3104_p1), %s2752_s11, 4294966272  ;;  %s23_s29 = sadd.s32 1, %s3377_s29   ;;  %s4331_s27 = sld [smem:[#allocation9_spill]] }
 0x418   : > { %p20_p2 = scmp.ge.s32.totalorder %s23_s29, 4   ;;  %s4332_s28 = sld [smem:[#allocation10_spill]] }
 0x419   : > { %s4333_s24 = smov %s3361_s25  ;;  %s4334_s25 = smov %s3365_s26 }
 0x41a   : > { %s4335_s26 = smov %s3482_s15  ;;  %22 = sbr.rel (!%p20_p2) target bundleno = 6 (0x6), region = 111 }
 0x41f   :  { %2757 = vsyncpa [#allocation4], 1 }
 0x420   :  { %2759 = vsyncpa [#allocation4 + $0x1], 1 }
 0x421   :  { %2760 = vsyncpa [#allocation5], 1 }
 0x422   :  { %2762 = vsyncpa [#allocation5 + $0x1], 1 }

</bundles_post_ra>
